<compile_context>
chip_gen: v7x
topology: tpu7x:2x2x1
jax: 0.10.0
libtpu: 0.0.40
codegen_flags: <defaults>
</compile_context>

<pallas_src>
import functools

import jax
import jax.numpy as jnp
from jax.experimental import pallas as pl
from jax.experimental.pallas import tpu as pltpu

HIDDEN = 512  # PT_Backbone transformer dim == final_projection input dim


def _hw_config():
    """Generation-gated tile sizes (VMEM budget, MXU width, TensorCore count)."""
    kind = ""
    try:
        kind = jax.devices()[0].device_kind.lower()
    except Exception:
        pass
    if "v5" in kind and ("lite" in kind or "5e" in kind):
        # v5e: 128 MiB VMEM, slowest HBM, 4x128 MXU, 1 vst slot -> small matmul chunks.
        return dict(max_tn=2048, target_m=512, m_chunk=256, o_align=128,
                    vmem=64 * 1024 * 1024, cores=1)
    if "v6" in kind:
        # v6e: 128 MiB VMEM, 2x256 MXU, 1 TC per chip.
        return dict(max_tn=2048, target_m=1024, m_chunk=512, o_align=256,
                    vmem=64 * 1024 * 1024, cores=1)
    if "v7" in kind:
        # v7x: only 64 MiB VMEM (keep tiles modest), 2 TCs per chip.
        return dict(max_tn=1024, target_m=1024, m_chunk=1024, o_align=256,
                    vmem=32 * 1024 * 1024, cores=2)
    # Unknown generation: conservative settings that fit every TPU's scoped VMEM.
    return dict(max_tn=1024, target_m=512, m_chunk=512, o_align=128,
                vmem=32 * 1024 * 1024, cores=1)


def _proj_max_kernel(f_ref, w_ref, b_ref, o_ref, acc_ref, *, n_points, pts_chunk):
    # f_ref:   (BT, TN, H)      bf16 feature tile (BT point clouds x TN points)
    # w_ref:   (H, O_blk)       bf16 final_projection.weight.T slice (lane-padded)
    # b_ref:   (1, O_blk)       f32 final_projection.bias slice
    # o_ref:   (1, BT, O_blk)   f32 max-pooled outputs for this (batch group, O split)
    # acc_ref: (BT, 8, O_blk)   f32 running max, resident across the point grid axis
    k = pl.program_id(2)
    nk = pl.num_programs(2)

    @pl.when(k == 0)
    def _init():
        acc_ref[...] = jnp.full(acc_ref.shape, -jnp.inf, dtype=acc_ref.dtype)

    bt, tn, h = f_ref.shape
    o = w_ref.shape[1]
    w = w_ref[...]
    ragged = (n_points % tn) != 0          # static: only the last tile has invalid rows
    n_chunks = tn // pts_chunk

    # Fold the matmul into the running max one sub-chunk at a time so the f32
    # intermediate never exceeds ~(BT*pts_chunk, O_blk).
    for c in range(n_chunks):
        f2 = f_ref[:, c * pts_chunk:(c + 1) * pts_chunk, :].reshape(bt * pts_chunk, h)
        y = jnp.dot(f2, w, preferred_element_type=jnp.float32)      # (bt*pc, o) f32
        y4 = y.reshape(bt, pts_chunk // 8, 8, o)
        if ragged:
            # Mask points beyond N with -inf (only ever matters on the last tile).
            row = (jax.lax.broadcasted_iota(jnp.int32, (1, pts_chunk // 8, 8, 1), 1) * 8
                   + jax.lax.broadcasted_iota(jnp.int32, (1, pts_chunk // 8, 8, 1), 2))
            gidx = k * tn + c * pts_chunk + row
            y4 = jnp.where(gidx < n_points, y4, -jnp.inf)
        # Fold down to 8 sublanes per cloud with pure-VPU maxima (no per-tile XLU).
        acc_ref[...] = jnp.maximum(acc_ref[...], jnp.max(y4, axis=1))

    @pl.when(k == nk - 1)
    def _finalize():
        pooled = jnp.max(acc_ref[...], axis=1)                       # (bt, o)  XLU once
        o_ref[0] = (pooled + b_ref[...]).astype(o_ref.dtype)         # bias after max


def final_projection_max(features, w_proj, b_proj, *, hw=None):
    """features: (B, N, 512) -> (B, out_channels) via Linear(512, O) + max over dim 1."""
    B, N, H = features.shape
    assert H == HIDDEN, (H, HIDDEN)
    O = w_proj.shape[1]
    hw = hw or _hw_config()

    # bf16 matmul operands (f32 accumulation stays in the kernel).
    features = features.astype(jnp.bfloat16)
    w_proj = w_proj.astype(jnp.bfloat16)
    b_proj = b_proj.astype(jnp.float32).reshape(1, O)

    # Pad out_channels to a lane-dense MXU-friendly multiple (128 v5e, 256 v6e/v7x).
    o_align = hw["o_align"]
    O_pad = max(128, ((O + o_align - 1) // o_align) * o_align)
    if O_pad != O:
        w_proj = jnp.pad(w_proj, ((0, 0), (0, O_pad - O)))
        b_proj = jnp.pad(b_proj, ((0, 0), (0, O_pad - O)))

    # Tiny-N corner case only: bring N up to one bf16 sublane tile with first-point
    # copies (max-invariant).  Normal N never takes this path, so no full HBM repack.
    if N < 16:
        fill = jnp.broadcast_to(features[:, :1, :], (B, 16 - N, H))
        features = jnp.concatenate([features, fill], axis=1)
        N = 16

    # Point tile: multiple of 16 (bf16 packed sublane tile), never larger than N so
    # only the *last* tile can be ragged (masked in-kernel, no padded feature copy).
    TN = min(hw["max_tn"], (N // 16) * 16)
    K = (N + TN - 1) // TN

    # Pack batches when TN is small so BT*TN fills the MXU M dimension; a ragged last
    # batch group is handled by Pallas partial-block reads (garbage rows sliced off).
    BT = max(1, min(B, hw["target_m"] // TN))
    G = (B + BT - 1) // BT

    # Split output channels across an extra parallel axis when a single batch group
    # would otherwise leave the second v7x TensorCore idle.
    S = 1
    if hw["cores"] >= 2 and G < hw["cores"] and O_pad % 256 == 0:
        S = 2
    O_blk = O_pad // S

    # Matmul sub-chunk: largest multiple of 16 dividing TN with BT*chunk <= m_chunk.
    pts_chunk = TN
    for cand in range(16, TN + 1, 16):
        if TN % cand == 0 and BT * cand <= hw["m_chunk"]:
            pts_chunk = cand

    kernel = functools.partial(_proj_max_kernel, n_points=N, pts_chunk=pts_chunk)

    out = pl.pallas_call(
        kernel,
        out_shape=jax.ShapeDtypeStruct((G, BT, O_pad), jnp.float32),
        grid_spec=pltpu.PrefetchScalarGridSpec(
            num_scalar_prefetch=0,
            grid=(G, S, K),
            in_specs=[
                pl.BlockSpec((BT, TN, H), lambda b, s, k: (b, k, 0)),
                pl.BlockSpec((H, O_blk), lambda b, s, k: (0, s)),
                pl.BlockSpec((1, O_blk), lambda b, s, k: (0, s)),
            ],
            out_specs=pl.BlockSpec((1, BT, O_blk), lambda b, s, k: (b, 0, s)),
            scratch_shapes=[pltpu.VMEM((BT, 8, O_blk), jnp.float32)],
        ),
        compiler_params=pltpu.CompilerParams(
            dimension_semantics=("parallel", "parallel", "arbitrary"),
            vmem_limit_bytes=hw["vmem"],
        ),
    )(features, w_proj, b_proj)

    return out.reshape(G * BT, O_pad)[:B, :O]


def backbone_standin(x, w_embed, b_embed):
    # TODO(synk): PT_Backbone(512, 4, 512, 128, in_channels) is not defined in the
    # reference source; replaced by a deterministic per-point Linear+ReLU stand-in with
    # the same (B, N, 3) -> (B, N, 512) contract.  Emits bf16 so the Pallas matmul
    # reads half the HBM bytes.
    h = jax.nn.relu(jnp.einsum('bnc,ch->bnh', x, w_embed) + b_embed)
    return h.astype(jnp.bfloat16)


def point_transformer_forward(x, params):
    features = backbone_standin(x, params["w_embed"], params["b_embed"])
    return final_projection_max(features, params["w_proj"], params["b_proj"])


if __name__ == "__main__":
    key = jax.random.PRNGKey(0)
    B, N, C = 3, 200, 3         # batch, num points (ragged vs 16), in_channels (xyz)
    out_channels = 256          # small stand-in for the default 1024

    k1, k2, k3, k4, k5 = jax.random.split(key, 5)
    x = jax.random.normal(k1, (B, N, C), dtype=jnp.float32)

    # Deterministic parameter init (PyTorch nn.Linear default: U(-1/sqrt(in), 1/sqrt(in)))
    ke = 1.0 / (C ** 0.5)
    kf = 1.0 / (HIDDEN ** 0.5)
    params = {
        "w_embed": jax.random.uniform(k2, (C, HIDDEN), jnp.float32, -ke, ke),
        "b_embed": jax.random.uniform(k3, (HIDDEN,), jnp.float32, -ke, ke),
        # stored pre-transposed: (in=512, out) == torch weight.T
        "w_proj": jax.random.uniform(k4, (HIDDEN, out_channels), jnp.float32, -kf, kf),
        "b_proj": jax.random.uniform(k5, (1, out_channels), jnp.float32, -kf, kf),
    }

    out = point_transformer_forward(x, params)
    out = jax.block_until_ready(out)

    # Pure-JAX reference for the kernel-covered path (bf16 Linear + max over points + bias).
    feats = backbone_standin(x, params["w_embed"], params["b_embed"])         # bf16
    w_bf16 = params["w_proj"].astype(jnp.bfloat16)
    ref_y = jnp.einsum('bnh,ho->bno',
                       feats.astype(jnp.float32), w_bf16.astype(jnp.float32))
    ref = jnp.max(ref_y, axis=1) + params["b_proj"][0]

    assert out.shape == (B, out_channels), out.shape
    err = float(jnp.max(jnp.abs(out - ref)))
    assert jnp.allclose(out, ref, atol=2e-3, rtol=2e-3), err
    print("KERNEL_OK")
</pallas_src>

<mosaic_0001>
module attributes {stable_mosaic.version = 11 : i64} {
  func.func @_proj_max_kernel(%arg0: i32, %arg1: i32, %arg2: i32, %arg3: memref<2x192x512xbf16, #tpu.memory_space<vmem>>, %arg4: memref<512x256xbf16, #tpu.memory_space<vmem>>, %arg5: memref<1x256xf32, #tpu.memory_space<vmem>>, %arg6: memref<1x2x256xf32, #tpu.memory_space<vmem>>, %arg7: memref<2x8x256xf32, #tpu.memory_space<vmem>>) attributes {dimension_semantics = [#tpu.dimension_semantics<parallel>, #tpu.dimension_semantics<parallel>, #tpu.dimension_semantics<arbitrary>], iteration_bounds = array<i64: 2, 1, 2>, scalar_prefetch = 0 : i64, scratch_operands = 1 : i64, tpu.core_type = #tpu.core_type<tc>, window_params = [{transform_indices = @transform_0, window_bounds = array<i64: 2, 192, 512>}, {transform_indices = @transform_1, window_bounds = array<i64: 512, 256>}, {transform_indices = @transform_2, window_bounds = array<i64: 1, 256>}, {transform_indices = @transform_3, window_bounds = array<i64: 1, 2, 256>}]} {
    %c0_i32 = arith.constant 0 : i32
    %0 = arith.cmpi eq, %arg2, %c0_i32 : i32
    %1 = arith.extui %0 : i1 to i32
    %c0_i32_0 = arith.constant 0 : i32
    %2 = arith.cmpi ne, %1, %c0_i32_0 : i32
    scf.if %2 {
      %cst_15 = arith.constant 0xFF800000 : f32
      %30 = vector.broadcast %cst_15 : f32 to vector<2x8x256xf32>
      %c0_16 = arith.constant 0 : index
      %c0_17 = arith.constant 0 : index
      %c0_18 = arith.constant 0 : index
      %31 = vector.load %arg7[%c0_16, %c0_17, %c0_18] : memref<2x8x256xf32, #tpu.memory_space<vmem>>, vector<2x8x256xf32>
      tpu.vector_store %arg7[%c0_16, %c0_17, %c0_18], %30 {strides = array<i32>} : memref<2x8x256xf32, #tpu.memory_space<vmem>>, vector<2x8x256xf32>,
    } else {
    }
    %c0 = arith.constant 0 : index
    %c0_1 = arith.constant 0 : index
    %3 = vector.load %arg4[%c0, %c0_1] : memref<512x256xbf16, #tpu.memory_space<vmem>>, vector<512x256xbf16>
    %c0_2 = arith.constant 0 : index
    %c0_3 = arith.constant 0 : index
    %c0_4 = arith.constant 0 : index
    %4 = vector.load %arg3[%c0_2, %c0_3, %c0_4] : memref<2x192x512xbf16, #tpu.memory_space<vmem>>, vector<2x192x512xbf16>
    %5 = vector.shape_cast %4 : vector<2x192x512xbf16> to vector<384x512xbf16>
    %cst = arith.constant dense<0.000000e+00> : vector<384x256xf32>
    %6 = tpu.matmul %5, %3, %cst {dimension_numbers = #tpu.dot_dimension_numbers<[1], [0], [0], [1], [0, 0, 1, 1], [], []>} : vector<384x512xbf16>, vector<512x256xbf16>, vector<384x256xf32> -> vector<384x256xf32>
    %7 = vector.shape_cast %6 : vector<384x256xf32> to vector<2x24x8x256xf32>
    %8 = tpu.iota {dimensions = array<i32: 1>} : vector<1x24x8x1xi32>
    %c8_i32 = arith.constant 8 : i32
    %9 = vector.broadcast %c8_i32 : i32 to vector<1x24x8x1xi32>
    %10 = arith.muli %8, %9 : vector<1x24x8x1xi32>
    %11 = tpu.iota {dimensions = array<i32: 2>} : vector<1x24x8x1xi32>
    %12 = arith.addi %10, %11 : vector<1x24x8x1xi32>
    %c192_i32 = arith.constant 192 : i32
    %13 = arith.muli %arg2, %c192_i32 : i32
    %c0_i32_5 = arith.constant 0 : i32
    %14 = arith.addi %13, %c0_i32_5 : i32
    %15 = vector.broadcast %14 : i32 to vector<1x24x8x1xi32>
    %16 = arith.addi %15, %12 : vector<1x24x8x1xi32>
    %c200_i32 = arith.constant 200 : i32
    %17 = vector.broadcast %c200_i32 : i32 to vector<1x24x8x1xi32>
    %18 = arith.cmpi slt, %16, %17 : vector<1x24x8x1xi32>
    %cst_6 = arith.constant 0xFF800000 : f32
    %19 = vector.shape_cast %18 : vector<1x24x8x1xi1> to vector<1x24x8x1xi1>
    %20 = vector.broadcast %19 : vector<1x24x8x1xi1> to vector<2x24x8x256xi1>
    %21 = vector.broadcast %cst_6 : f32 to vector<2x24x8x256xf32>
    %22 = arith.select %20, %7, %21 : vector<2x24x8x256xi1>, vector<2x24x8x256xf32>
    %c0_7 = arith.constant 0 : index
    %c0_8 = arith.constant 0 : index
    %c0_9 = arith.constant 0 : index
    %23 = vector.load %arg7[%c0_7, %c0_8, %c0_9] : memref<2x8x256xf32, #tpu.memory_space<vmem>>, vector<2x8x256xf32>
    %cst_10 = arith.constant dense<0xFF800000> : vector<2x8x256xf32>
    %24 = vector.multi_reduction <maximumf>, %22, %cst_10 [1] : vector<2x24x8x256xf32> to vector<2x8x256xf32>
    %25 = arith.maximumf %23, %24 : vector<2x8x256xf32>
    %c0_11 = arith.constant 0 : index
    %c0_12 = arith.constant 0 : index
    %c0_13 = arith.constant 0 : index
    %26 = vector.load %arg7[%c0_11, %c0_12, %c0_13] : memref<2x8x256xf32, #tpu.memory_space<vmem>>, vector<2x8x256xf32>
    tpu.vector_store %arg7[%c0_11, %c0_12, %c0_13], %25 {strides = array<i32>} : memref<2x8x256xf32, #tpu.memory_space<vmem>>, vector<2x8x256xf32>,
    %c1_i32 = arith.constant 1 : i32
    %27 = arith.cmpi eq, %arg2, %c1_i32 : i32
    %28 = arith.extui %27 : i1 to i32
    %c0_i32_14 = arith.constant 0 : i32
    %29 = arith.cmpi ne, %28, %c0_i32_14 : i32
    scf.if %29 {
      %c0_15 = arith.constant 0 : index
      %c0_16 = arith.constant 0 : index
      %c0_17 = arith.constant 0 : index
      %30 = vector.load %arg7[%c0_15, %c0_16, %c0_17] : memref<2x8x256xf32, #tpu.memory_space<vmem>>, vector<2x8x256xf32>
      %cst_18 = arith.constant dense<0xFF800000> : vector<2x256xf32>
      %31 = vector.multi_reduction <maximumf>, %30, %cst_18 [1] : vector<2x8x256xf32> to vector<2x256xf32>
      %c0_19 = arith.constant 0 : index
      %c0_20 = arith.constant 0 : index
      %32 = vector.load %arg5[%c0_19, %c0_20] : memref<1x256xf32, #tpu.memory_space<vmem>>, vector<1x256xf32>
      %33 = vector.broadcast %32 : vector<1x256xf32> to vector<2x256xf32>
      %34 = arith.addf %31, %33 : vector<2x256xf32>
      %c0_21 = arith.constant 0 : index
      %c0_22 = arith.constant 0 : index
      %c0_23 = arith.constant 0 : index
      %35 = vector.load %arg6[%c0_21, %c0_22, %c0_23] : memref<1x2x256xf32, #tpu.memory_space<vmem>>, vector<1x2x256xf32>
      %36 = vector.shape_cast %35 : vector<1x2x256xf32> to vector<2x256xf32>
      %37 = vector.shape_cast %34 : vector<2x256xf32> to vector<1x2x256xf32>
      tpu.vector_store %arg6[%c0_21, %c0_22, %c0_23], %37 {strides = array<i32>} : memref<1x2x256xf32, #tpu.memory_space<vmem>>, vector<1x2x256xf32>,
    } else {
    }
    return
  }
  func.func @transform_0(%arg0: i32, %arg1: i32, %arg2: i32) -> (i32, i32, i32) {
    %c0_i32 = arith.constant 0 : i32
    %c0_i32_0 = arith.constant 0 : i32
    return %arg0, %arg2, %c0_i32 : i32, i32, i32
  }
  func.func @transform_1(%arg0: i32, %arg1: i32, %arg2: i32) -> (i32, i32) {
    %c0_i32 = arith.constant 0 : i32
    %c0_i32_0 = arith.constant 0 : i32
    return %c0_i32, %arg1 : i32, i32
  }
  func.func @transform_2(%arg0: i32, %arg1: i32, %arg2: i32) -> (i32, i32) {
    %c0_i32 = arith.constant 0 : i32
    %c0_i32_0 = arith.constant 0 : i32
    return %c0_i32, %arg1 : i32, i32
  }
  func.func @transform_3(%arg0: i32, %arg1: i32, %arg2: i32) -> (i32, i32, i32) {
    %c0_i32 = arith.constant 0 : i32
    %c0_i32_0 = arith.constant 0 : i32
    return %arg0, %c0_i32, %arg1 : i32, i32, i32
  }
}

</mosaic_0001>

<bundles_post_ra>
// kernel: tpu_custom_call.1
= control target key start
LH: loop header
LB: loop body
LE: loop exit
PB: predicated region body
PF: predicated region fallthrough
CT: control target
= control target key end

     0   :  { %s3850_s0 = inlined_call_operand.hbm [shape: bf16[3,200,512], index: 0, kind: input, shape index: {}]   ;;  %s3851_s1 = inlined_call_operand.hbm [shape: bf16[512,256], index: 1, kind: input, shape index: {}]   ;;  %s3852_s2 = inlined_call_operand.vmem [shape: f32[1,256], index: 2, kind: input, shape index: {}]   ;;  %s3853_s3 = inlined_call_operand.hbm [shape: f32[2,2,256], index: 3, kind: output, shape index: {}]  }
   0x1   :  { %3879 = sst [smem:[#allocation25_spill]] %s3851_s1 }
   0x2   :  { %3880 = sst [smem:[#allocation26_spill]] %s3853_s3 }
   0x3   :  { %8 = vsyncpa [#allocation4], 0 }
   0x4   :  { %10 = vsyncpa [#allocation4 + $0x1], 0 }
   0x5   :  { %11 = vsyncpa [#allocation7], 0 }
   0x6   :  { %12 = vsyncpa [#allocation5], 0 }
   0x7   :  { %14 = vsyncpa [#allocation5 + $0x1], 0  ;;  %s3189_s12 = smov 0   ;;  %s3191_s13 = smov 0  }
   0x8   :  { %s3193_s14 = smov 0   ;;  %s3195_s15 = smov 0  }
   0x9   :  { %s3197_s16 = smov 0   ;;  %s3199_s17 = smov 0  }
   0xa   :  { %s3201_s18 = smov 0   ;;  %s3203_s19 = smov 0  }
   0xb   :  { %s3205_s20 = smov 0   ;;  %s3207_s21 = smov 0  }
   0xc   :  { %s3209_s22 = smov 0  }
   0xd LB: > { %3881 = sst [smem:[#allocation14_spill]] %s3116_s12  ;;  %s2359_s23 = sadd.s32 4294967295, %s3156_s22   ;;  %s3156_s22 = sphi %s3209_s22, %s20_s22   ;;  %s3152_s21 = sphi %s3207_s21, %s3934_s21   ;;  %s3148_s20 = sphi %s3205_s20, %s3940_s20   ;;  %s3144_s19 = sphi %s3203_s19, %s3932_s19   ;;  %s3140_s18 = sphi %s3201_s18, %s3939_s18   ;;  %s3136_s17 = sphi %s3199_s17, %s3931_s17   ;;  %s3132_s16 = sphi %s3197_s16, %s3938_s16   ;;  %s3128_s15 = sphi %s3195_s15, %s3937_s15   ;;  %s3124_s14 = sphi %s3193_s14, %s3929_s14   ;;  %s3120_s13 = sphi %s3191_s13, %s3936_s13   ;;  %s3116_s12 = sphi %s3189_s12, %s3935_s12  }
   0xe   : > { %3882 = sst [smem:[#allocation15_spill]] %s3124_s14  ;;  %s2360_s24 = sadd.s32 4294967294, %s3156_s22  }
   0xf   : > { %3883 = sst [smem:[#allocation16_spill]] %s3136_s17  ;;  %s32_s25 = sadd.s32 1, %s3148_s20 }
  0x10   : > { %3884 = sst [smem:[#allocation17_spill]] %s3152_s21  ;;  %s39_s26 = sadd.s32 1, %s3152_s21 }
  0x11   : > { %3885 = sst [smem:[#allocation18_spill]] %s3156_s22  ;;  %p33_p0 = scmp.ge.s32.totalorder %s32_s25, 2 }
  0x12   : > { %s48_s27 = sadd.s32 1, %s3136_s17  ;;  %p55_p1 = scmp.ne.s32.totalorder %s3136_s17, %s3132_s16 }
  0x13   : > { %p56_p2 = scmp.eq.s32.totalorder %s3156_s22, 0  ;;  %s3942_s25 = smov (%p33_p0, %s32_s25), 0 }
  0x14   : > { %3886 = sst [smem:[#allocation19_spill]] %s3942_s25  ;;  %s3944_s26 = smov (!%p33_p0, %s39_s26), %s3152_s21 }
  0x15   : > { %s44_s28 = ssub.s32 %s3148_s20, %s3942_s25  ;;  %p3255_p3 = por %p56_p2, %p55_p1 }
  0x16   : > { %p41_p4 = scmp.ge.s32.totalorder %s3944_s26, 2  ;;  %p61_p5 = scmp.ne.s32.totalorder %s3132_s16, %s3128_s15 }
  0x17   : > { %s3887_s29 = scalar_select %p3255_p3, 1, 0 }
  0x18   : > { %p3260_p6 = scmp.eq.s32.totalorder %s2359_s23, 0  ;;  %s128_s4 = sadd.s32 1, %s3124_s14 }
  0x19   : > { %s3946_s26 = smov (%p41_p4, %s3944_s26), 0  ;;  %p138_p8 = scmp.ne.s32.totalorder %s3124_s14, %s3120_s13 }
  0x1a   : > { %s3888_s30 = scalar_select %p3260_p6, 1, 0 }
  0x1b   : > { %3889 = sst [smem:[#allocation20_spill]] %s3946_s26  ;;  %p3269_p7 = por %p3260_p6, %p61_p5 }
  0x1c   : > { %s43_s6 = ssub.s32 %s3152_s21, %s3946_s26  ;;  %p139_p9 = scmp.eq.s32.totalorder %s2359_s23, 3 }
  0x1d   : > { %s3890_s5 = scalar_select %p3269_p7, 1, 0 }
  0x1e   : > { %s45_s7 = sor.u32 %s44_s28, %s43_s6  ;;  %p126_p10 = scmp.eq.s32.totalorder %s43_s6, 0 }
  0x1f   : > { %p46_p11 = scmp.eq.s32.totalorder %s45_s7, 0  ;;  %p3277_p12 = por %p139_p9, %p138_p8 }
  0x20   : > { %s3282_s9 = scalar_select %p126_p10, %s3124_s14, %s128_s4  }
  0x21   : > { %s3891_s8 = scalar_select %p3277_p12, 1, 0 }
  0x22   : > { %3893 = sst [smem:[#allocation22_spill]] %s3282_s9  ;;  %p144_p13 = scmp.ne.s32.totalorder %s3120_s13, %s3116_s12 }
  0x23   : > { %3892 = sst [smem:[#allocation21_spill]] %s3891_s8  ;;  %p145_p0 = scmp.eq.s32.totalorder %s2360_s24, 3 }
  0x24   : > { %s3285_s10 = scalar_select %p46_p11, %s3136_s17, %s48_s27  }
  0x25   : > { %p2361_p1 = scmp.ge.s32.totalorder %s3156_s22, 1  ;;  %p152_p2 = scmp.lt.s32.totalorder %s3156_s22, 5 }
  0x26   : > { %3894 = sst [smem:[#allocation23_spill]] %s3285_s10  ;;  %p3291_p4 = por %p145_p0, %p144_p13 }
  0x27   : > { %p3295_p5 = pnand %p2361_p1, %p152_p2  ;;  %s3158_s23 = smov [#allocation6]  }
  0x28   : > { %s3895_s11 = scalar_select %p3291_p4, 1, 0 }
  0x29   : > { %s3897_s15 = scalar_select %p3295_p5, 1, 0 }
  0x2a   : > { %3896 = sst [smem:[#allocation24_spill]] %s3895_s11  ;;  %s167_s28 = sshll.u32 %s3158_s23, 4  ;;  %s168_s28 = int_to_ptr.vmem [resolvable:$true] %s167_s28 }
  0x2b   : > { %p2653_p8 = pneg %p3295_p5  ;;  %s3899_s1 = sld [smem:[#allocation25_spill]] }
  0x2d   : > { %p3303_p9 = pnand %p2653_p8, %p3260_p6 }
  0x2f   : > { %p3004_p11 = pneg %p3303_p9 }
  0x31   : > { %s3002_s6 = scalar_lea.hbm %s3899_s1, 8192 }
  0x32   : > { %p3003_p10 = scmp.ne.s32.totalorder %s3899_s1, %s3002_s6  ;;  %p3009_p1 = scmp.lt.u32.totalorder %s3002_s6, %s3899_s1 }
  0x34   : > { %p3005_p13 = pnand %p3004_p11, %p3003_p10 }
  0x36   : > { %p3006_p0 = pneg %p3005_p13 }
  0x38   : > { %p3011_p2 = pnand %p3009_p1, %p3006_p0 }
  0x3a   : > { %3014 = shalt.err (!%p3011_p2)
}
  0x3b   : > { %s3015_s10 = scalar_lea.vmem %s168_s28, 8192  ;;  %p3023_p6 = scmp.lt.s32.totalorder %s168_s28, %s168_s28 }
  0x3c   : > { %p3016_p8 = scmp.ne.s32.totalorder %s168_s28, %s3015_s10  ;;  %p3024_p7 = scmp.lt.s32.totalorder %s3015_s10, %s3015_s10 }
  0x3e   : > { %p3018_p4 = pnand %p3016_p8, %p3004_p11  ;;  %p3025_p5 = por %p3024_p7, %p3023_p6 }
  0x40   : > { %p3019_p12 = pneg %p3018_p4 }
  0x42   : > { %p3026_p3 = pnand %p3025_p5, %p3019_p12 }
  0x44   : > { %3029 = shalt.err (!%p3026_p3)
}
  0x45   : > { %s3159_s26 = smov 128   ;;  %s3160_s24 = smov 8  }
  0x46   : > { %2656 = dma.hbm_to_vmem [thread:$0]  (!%p3303_p9), %s3899_s1, 8192, %s168_s28, [#allocation7], %s3159_s26, %s3159_s26, %s3160_s24  }
  0x47   : > { %p2364_p10 = scmp.ge.s32.totalorder %s3156_s22, 4 }
  0x48   : > { %p3900_p13 = scmp.ne.s32.totalorder (!%p2364_p10), %s3887_s29, 0 }
  0x49   : > { %185 = sbr.rel (%p2364_p10) target bundleno = 112 (0x70), region = 24 }
  0x50   : > { %188 = sbr.rel (!%p3900_p13) target bundleno = 112 (0x70), region = 28 }
  0x57   : > { %s189_s25 = sand.u32 1, %s3136_s17   ;;  %s2365_s10 = sshll.u32 %s3152_s21, 1 }
  0x58   : > { %s2643_s6 = smul.u32 768, %s189_s25  ;;  %s196_s9 = ssub.s32 3, %s2365_s10 }
  0x59   : > { %s195_s23 = smul.u32 24, %s3148_s20  ;;  %p197_p3 = scmp.lt.s32.totalorder %s196_s9, 2 }
  0x5a   : > { %s3329_s7 = scalar_lea.sflag [#allocation4], %s189_s25  ;;  %s193_s29 = scalar_lea.vmem [#allocation3], %s2643_s6 }
  0x5b   : > { %s200_s27 = ssub.s32 25, %s195_s23  ;;  %s3948_s9 = smov (!%p197_p3, %s196_s9), 2 }
  0x5c   : > { %p201_p6 = scmp.lt.s32.totalorder %s200_s27, 24  ;;  %s2366_s4 = sshll.u32 %s3948_s9, 6 }
  0x5e   : > { %s3950_s27 = smov (!%p201_p6, %s200_s27), 24 }
  0x5f   : > { %s203_s28 = smul.u32 %s2366_s4, %s3950_s27 }
  0x61   : > { %s2367_s26 = sshll.u32 %s203_s28, 2 }
  0x62   : > { %s206_s24 = ssub.s32 12288, %s2367_s26 }
  0x63   : > { %207 = vsyncadd %s3329_s7, %s206_s24  ;;  %p3332_p7 = scmp.ne.s32.totalorder %s2367_s26, 0  ;;  %s2545_s10 = smul.u32 96, %s3148_s20 }
  0x64   : > { %s2644_s23 = smul.u32 200, %s3152_s21  ;;  %s2372_s17 = sshll.u32 %s3950_s27, 4 }
  0x65   : > { %s215_s14 = smul.u32 %s2372_s17, %s3948_s9  ;;  %s220_s11 = sld [smem:[#allocation0]]  }
  0x66   : > { %s211_s12 = sadd.s32 %s2644_s23, %s2545_s10  ;;  %s228_s4 = sshll.u32 %s193_s29, 4  ;;  %s229_s4 = int_to_ptr.vmem [resolvable:$true] %s228_s4 }
  0x67   : > { %s2371_s28 = sshll.u32 %s211_s12, 6  ;;  %s230_s24 = sshll.u32 %s215_s14, 4 }
  0x68   : > { %s213_s6 = scalar_lea.hbm %s3850_s0, %s2371_s28  ;;  %s3161_s26 = smov 6400  }
  0x69   : > { %235 = sst [smem:[#allocation10]] %s3161_s26  ;;  %s3162_s8 = smov 6144  }
  0x6a   : > { %237 = sst [smem:[#allocation10 + $0x1]] %s3162_s8  ;;  %s3163_s17 = smov 256  }
  0x6b   : > { %s2373_s3 = sshll.u32 %s220_s11, 26  ;;  %239 = sst [smem:[#allocation10 + $0x2]] %s3950_s27 }
  0x6c   : > { %s2374_s21 = sadd.s32 134217728, %s2373_s3  ;;  %241 = sst [smem:[#allocation10 + $0x3]] %s3163_s17 }
  0x6d   : > { %243 = sst [smem:[#allocation10 + $0x4]] %s3163_s17  ;;  %s3164_s9 = smov 16  }
  0x6e   : > { %245 = sst [smem:[#allocation10 + $0x5]] %s3164_s9  ;;  %s3165_s12 = smov [#allocation9]  }
  0x6f   : > { %247 = dma.general (%p3332_p7), %s213_s6, %s230_s24, %s229_s4, %s3329_s7, %s3165_s12, [#allocation10], %s2374_s21, 0  }
  0x70 PF: > { %p3902_p12 = scmp.ne.s32.totalorder %s3897_s15, 0 }
  0x71   : > { %s255_s14 = sand.u32 (!%p3902_p12), 1, %s3132_s16   ;;  %p3903_p4 = scmp.ne.s32.totalorder (!%p3902_p12), %s3890_s5, 0 }
  0x72   : > { %253 = sbr.rel (%p3902_p12) target bundleno = 666 (0x29a), region = 32  ;;  %s256_s8 = scalar_lea.sflag (!%p3902_p12), [#allocation4], %s255_s14 }
  0x73   : > { %s2645_s22 = smul.u32 (!%p3902_p12), 768, %s255_s14 }
  0x75   : > { %s3347_s3 = scalar_lea.vmem (!%p3902_p12), [#allocation3], %s2645_s22 }
  0x79   : > { %3103 = dma.done.wait (%p3903_p4), %s256_s8, 12288  }
  0x7a   : > { %3105 = vsyncadd (%p3903_p4), %s256_s8, 4294955008  ;;  %p3904_p5 = scmp.ne.s32.totalorder %s3888_s30, 0 }
  0x7c   : > { %3107 = dma.done.wait (%p3904_p5), [#allocation7], 8192  }
  0x7d   : > { %3109 = vsyncadd (%p3904_p5), [#allocation7], 4294959104  ;;  %s287_s1 = sand.u32 1, %s3120_s13   ;;  %p2378_p9 = scmp.ne.s32.totalorder %s3140_s18, 0 }
  0x7e   : > { %s3360_s21 = sshll.u32 %s287_s1, 2  ;;  %v3166_v0 = vmov (!%p2378_p9), -inf  }
  0x7f   : > { %s289_s11 = scalar_lea.vmem [#allocation8], %s3360_s21  ;;  %311 = sbr.rel (%p2378_p9) target bundleno = 134 (0x86), region = 44  ;;  %312 = vst [vmem:[#allocation2] sm:$0xff] (!%p2378_p9), %v3166_v0  ;;  %313 = vst [vmem:[#allocation2 + $0x8] sm:$0xff] (!%p2378_p9), %v3166_v0 }
  0x80   : > { %314 = vst [vmem:[#allocation2 + $0x10] sm:$0xff] (!%p2378_p9), %v3166_v0  ;;  %315 = vst [vmem:[#allocation2 + $0x18] sm:$0xff] (!%p2378_p9), %v3166_v0 }
  0x86 PF: > { %v2762_v1 = vld [vmem:[#allocation6 + $0x4] ss:$8 sps:$4 sm:$0xff]   ;;  %v2766_v3 = vld [vmem:[#allocation6] ss:$8 sps:$4 sm:$0xff]   ;;  %v2768_v5 = vld [vmem:[#allocation6 + $0x14] ss:$8 sps:$4 sm:$0xff]  }
  0x87   : > { %v2764_v2 = vld [vmem:[#allocation6 + $0x104] ss:$8 sps:$4 sm:$0xff]   ;;  %1276 = vmatprep.subr.bf16.mxu1 %v2762_v1  ;;  %v2767_v4 = vld [vmem:[#allocation6 + $0x100] ss:$8 sps:$4 sm:$0xff]   ;;  %v2770_v6 = vld [vmem:[#allocation6 + $0x114] ss:$8 sps:$4 sm:$0xff]  }
  0x88   : > { %1549 = vmatprep.subr.bf16.mxu0 %v2764_v2  ;;  %1277 = vmatpush1.bf16.msra.mxu1 %v2766_v3  ;;  %v2772_v7 = vld [vmem:[#allocation6 + $0x10] ss:$8 sps:$4 sm:$0xff]   ;;  %v2774_v9 = vld [vmem:[#allocation6 + $0x24] ss:$8 sps:$4 sm:$0xff]   ;;  %v2778_v11 = vld [vmem:[#allocation6 + $0x20] ss:$8 sps:$4 sm:$0xff]  }
  0x89   : > { %1550 = vmatpush1.bf16.msra.mxu0 %v2767_v4  ;;  %1278 = vmatprep.subr.bf16.mxu1 %v2768_v5  ;;  %v2773_v8 = vld [vmem:[#allocation6 + $0x110] ss:$8 sps:$4 sm:$0xff]   ;;  %v2776_v10 = vld [vmem:[#allocation6 + $0x124] ss:$8 sps:$4 sm:$0xff]   ;;  %v2779_v12 = vld [vmem:[#allocation6 + $0x120] ss:$8 sps:$4 sm:$0xff]  }
  0x8a   : > { %1551 = vmatprep.subr.bf16.mxu0 %v2770_v6  ;;  %v2780_v13 = vld [vmem:[#allocation6 + $0x34] ss:$8 sps:$4 sm:$0xff]   ;;  %v2784_v15 = vld [vmem:[#allocation6 + $0x30] ss:$8 sps:$4 sm:$0xff]   ;;  %v2786_v17 = vld [vmem:[#allocation6 + $0x44] ss:$8 sps:$4 sm:$0xff]  }
  0x8b   : > { %v2782_v14 = vld [vmem:[#allocation6 + $0x134] ss:$8 sps:$4 sm:$0xff]   ;;  %v2785_v16 = vld [vmem:[#allocation6 + $0x130] ss:$8 sps:$4 sm:$0xff]   ;;  %v2788_v18 = vld [vmem:[#allocation6 + $0x144] ss:$8 sps:$4 sm:$0xff]  }
  0x8c   : > { %1279 = vmatpush1.bf16.msra.mxu1 %v2772_v7  ;;  %v2790_v19 = vld [vmem:[#allocation6 + $0x40] ss:$8 sps:$4 sm:$0xff]   ;;  %v2792_v21 = vld [vmem:[#allocation6 + $0x54] ss:$8 sps:$4 sm:$0xff]   ;;  %v2796_v23 = vld [vmem:[#allocation6 + $0x50] ss:$8 sps:$4 sm:$0xff]  }
  0x8d   : > { %1552 = vmatpush1.bf16.msra.mxu0 %v2773_v8  ;;  %1280 = vmatprep.subr.bf16.mxu1 %v2774_v9  ;;  %v2791_v20 = vld [vmem:[#allocation6 + $0x140] ss:$8 sps:$4 sm:$0xff]   ;;  %v2794_v22 = vld [vmem:[#allocation6 + $0x154] ss:$8 sps:$4 sm:$0xff]   ;;  %v2797_v24 = vld [vmem:[#allocation6 + $0x150] ss:$8 sps:$4 sm:$0xff]  }
  0x8e   : > { %1553 = vmatprep.subr.bf16.mxu0 %v2776_v10  ;;  %v2798_v25 = vld [vmem:[#allocation6 + $0x64] ss:$8 sps:$4 sm:$0xff]   ;;  %v2802_v27 = vld [vmem:[#allocation6 + $0x60] ss:$8 sps:$4 sm:$0xff]   ;;  %v2804_v29 = vld [vmem:[#allocation6 + $0x74] ss:$8 sps:$4 sm:$0xff]  }
  0x8f   : > { %v2800_v26 = vld [vmem:[#allocation6 + $0x164] ss:$8 sps:$4 sm:$0xff]   ;;  %v2803_v28 = vld [vmem:[#allocation6 + $0x160] ss:$8 sps:$4 sm:$0xff]   ;;  %v2806_v30 = vld [vmem:[#allocation6 + $0x174] ss:$8 sps:$4 sm:$0xff]  }
  0x90   : > { %1281 = vmatpush1.bf16.msra.mxu1 %v2778_v11  ;;  %v2808_v31 = vld [vmem:[#allocation6 + $0x70] ss:$8 sps:$4 sm:$0xff]   ;;  %v2810_v33 = vld [vmem:[#allocation6 + $0x84] ss:$8 sps:$4 sm:$0xff]   ;;  %v2814_v35 = vld [vmem:[#allocation6 + $0x80] ss:$8 sps:$4 sm:$0xff]  }
  0x91   : > { %1554 = vmatpush1.bf16.msra.mxu0 %v2779_v12  ;;  %1282 = vmatprep.subr.bf16.mxu1 %v2780_v13  ;;  %v2809_v32 = vld [vmem:[#allocation6 + $0x170] ss:$8 sps:$4 sm:$0xff]   ;;  %v2812_v34 = vld [vmem:[#allocation6 + $0x184] ss:$8 sps:$4 sm:$0xff]   ;;  %v2815_v36 = vld [vmem:[#allocation6 + $0x180] ss:$8 sps:$4 sm:$0xff]  }
  0x92   : > { %1555 = vmatprep.subr.bf16.mxu0 %v2782_v14  ;;  %v2816_v37 = vld [vmem:[#allocation6 + $0x94] ss:$8 sps:$4 sm:$0xff]   ;;  %v2820_v39 = vld [vmem:[#allocation6 + $0x90] ss:$8 sps:$4 sm:$0xff]   ;;  %v2822_v41 = vld [vmem:[#allocation6 + $0xa4] ss:$8 sps:$4 sm:$0xff]  }
  0x93   : > { %v2818_v38 = vld [vmem:[#allocation6 + $0x194] ss:$8 sps:$4 sm:$0xff]   ;;  %v2821_v40 = vld [vmem:[#allocation6 + $0x190] ss:$8 sps:$4 sm:$0xff]   ;;  %v2824_v42 = vld [vmem:[#allocation6 + $0x1a4] ss:$8 sps:$4 sm:$0xff]  }
  0x94   : > { %1283 = vmatpush1.bf16.msra.mxu1 %v2784_v15  ;;  %v2826_v43 = vld [vmem:[#allocation6 + $0xa0] ss:$8 sps:$4 sm:$0xff]   ;;  %v2828_v45 = vld [vmem:[#allocation6 + $0xb4] ss:$8 sps:$4 sm:$0xff]   ;;  %v2832_v47 = vld [vmem:[#allocation6 + $0xb0] ss:$8 sps:$4 sm:$0xff]  }
  0x95   : > { %1556 = vmatpush1.bf16.msra.mxu0 %v2785_v16  ;;  %1284 = vmatprep.subr.bf16.mxu1 %v2786_v17  ;;  %v2827_v44 = vld [vmem:[#allocation6 + $0x1a0] ss:$8 sps:$4 sm:$0xff]   ;;  %v2830_v46 = vld [vmem:[#allocation6 + $0x1b4] ss:$8 sps:$4 sm:$0xff]   ;;  %v2833_v48 = vld [vmem:[#allocation6 + $0x1b0] ss:$8 sps:$4 sm:$0xff]  }
  0x96   : > { %1557 = vmatprep.subr.bf16.mxu0 %v2788_v18  ;;  %v2834_v49 = vld [vmem:[#allocation6 + $0xc4] ss:$8 sps:$4 sm:$0xff]   ;;  %v2838_v53 = vld [vmem:[#allocation6 + $0xc0] ss:$8 sps:$4 sm:$0xff]   ;;  %v2840_v55 = vld [vmem:[#allocation6 + $0xd4] ss:$8 sps:$4 sm:$0xff]  }
  0x97   : > { %v2860_v50 = vld [vmem:[%s3347_s3 + $0x4] ss:$16 sps:$4 sm:$0xff]   ;;  %v2863_v52 = vld [vmem:[%s3347_s3 + $0xc] ss:$16 sps:$4 sm:$0xff]   ;;  %v2839_v54 = vld [vmem:[#allocation6 + $0x1c0] ss:$8 sps:$4 sm:$0xff]  }
  0x98   : > { %1285 = vmatpush1.bf16.msra.mxu1 %v2790_v19  ;;  %v2836_v51 = vld [vmem:[#allocation6 + $0x1c4] ss:$8 sps:$4 sm:$0xff]   ;;  %1308 = vmatprep.mubr.bf16.mxu1 %v2860_v50  ;;  %v2842_v56 = vld [vmem:[#allocation6 + $0x1d4] ss:$8 sps:$4 sm:$0xff]   ;;  %v2844_v57 = vld [vmem:[#allocation6 + $0xd0] ss:$8 sps:$4 sm:$0xff]  }
  0x99   : > { %1558 = vmatpush1.bf16.msra.mxu0 %v2791_v20  ;;  %1286 = vmatprep.subr.bf16.mxu1 %v2792_v21  ;;  %v2845_v58 = vld [vmem:[#allocation6 + $0x1d0] ss:$8 sps:$4 sm:$0xff]   ;;  %v2846_v59 = vld [vmem:[#allocation6 + $0xe4] ss:$8 sps:$4 sm:$0xff]   ;;  %v2850_v61 = vld [vmem:[#allocation6 + $0xe0] ss:$8 sps:$4 sm:$0xff]  }
  0x9a   : > { %1559 = vmatprep.subr.bf16.mxu0 %v2794_v22  ;;  %1581 = vmatprep.mubr.bf16.mxu0 %v2863_v52  ;;  %v2848_v60 = vld [vmem:[#allocation6 + $0x1e4] ss:$8 sps:$4 sm:$0xff]   ;;  %v2851_v62 = vld [vmem:[#allocation6 + $0x1e0] ss:$8 sps:$4 sm:$0xff]   ;;  %v2852_v63 = vld [vmem:[#allocation6 + $0xf4] ss:$8 sps:$4 sm:$0xff]  }
  0x9b   : > { %v2854_v0 = vld [vmem:[#allocation6 + $0x1f4] ss:$8 sps:$4 sm:$0xff]   ;;  %v2856_v1 = vld [vmem:[#allocation6 + $0xf0] ss:$8 sps:$4 sm:$0xff]   ;;  %s1847_s30 = smul.u32 192, %s3140_s18  ;;  %p2539_p11 = scmp.ne.s32.totalorder %s3140_s18, 1 }
  0x9c   : > { %1287 = vmatpush1.bf16.msra.mxu1 %v2796_v23  ;;  %v2857_v2 = vld [vmem:[#allocation6 + $0x1f0] ss:$8 sps:$4 sm:$0xff]   ;;  %v2864_v5 = vld [vmem:[%s3347_s3 + $0x24] ss:$16 sps:$4 sm:$0xff]   ;;  %v2866_v6 = vld [vmem:[%s3347_s3 + $0x2c] ss:$16 sps:$4 sm:$0xff]  }
  0x9d   : > { %1560 = vmatpush1.bf16.msra.mxu0 %v2797_v24  ;;  %1288 = vmatprep.subr.bf16.mxu1 %v2798_v25  ;;  %v2858_v3 = vld [vmem:[%s3347_s3] ss:$16 sps:$4 sm:$0xff]   ;;  %v2861_v4 = vld [vmem:[%s3347_s3 + $0x8] ss:$16 sps:$4 sm:$0xff]   ;;  %v2870_v9 = vld [vmem:[%s3347_s3 + $0x44] ss:$16 sps:$4 sm:$0xff]  }
  0x9e   : > { %1561 = vmatprep.subr.bf16.mxu0 %v2800_v26  ;;  %v2868_v7 = vld [vmem:[%s3347_s3 + $0x20] ss:$16 sps:$4 sm:$0xff]   ;;  %v2869_v8 = vld [vmem:[%s3347_s3 + $0x28] ss:$16 sps:$4 sm:$0xff]   ;;  %v2872_v10 = vld [vmem:[%s3347_s3 + $0x4c] ss:$16 sps:$4 sm:$0xff]  }
  0x9f   : > { %v2874_v11 = vld [vmem:[%s3347_s3 + $0x40] ss:$16 sps:$4 sm:$0xff]   ;;  %v2875_v12 = vld [vmem:[%s3347_s3 + $0x48] ss:$16 sps:$4 sm:$0xff]   ;;  %v2876_v13 = vld [vmem:[%s3347_s3 + $0x64] ss:$16 sps:$4 sm:$0xff]  }
  0xa0   : > { %1289 = vmatpush1.bf16.msra.mxu1 %v2802_v27  ;;  %v2878_v14 = vld [vmem:[%s3347_s3 + $0x6c] ss:$16 sps:$4 sm:$0xff]   ;;  %v2880_v15 = vld [vmem:[%s3347_s3 + $0x60] ss:$16 sps:$4 sm:$0xff]   ;;  %v2881_v16 = vld [vmem:[%s3347_s3 + $0x68] ss:$16 sps:$4 sm:$0xff]  }
  0xa1   : > { %1562 = vmatpush1.bf16.msra.mxu0 %v2803_v28  ;;  %1290 = vmatprep.subr.bf16.mxu1 %v2804_v29  ;;  %v2882_v17 = vld [vmem:[%s3347_s3 + $0x84] ss:$16 sps:$4 sm:$0xff]   ;;  %v2884_v18 = vld [vmem:[%s3347_s3 + $0x8c] ss:$16 sps:$4 sm:$0xff]   ;;  %v2886_v19 = vld [vmem:[%s3347_s3 + $0x80] ss:$16 sps:$4 sm:$0xff]  }
  0xa2   : > { %1563 = vmatprep.subr.bf16.mxu0 %v2806_v30  ;;  %v2887_v20 = vld [vmem:[%s3347_s3 + $0x88] ss:$16 sps:$4 sm:$0xff]   ;;  %v2888_v21 = vld [vmem:[%s3347_s3 + $0xa4] ss:$16 sps:$4 sm:$0xff]   ;;  %v2890_v22 = vld [vmem:[%s3347_s3 + $0xac] ss:$16 sps:$4 sm:$0xff]  }
  0xa3   : > { %v2892_v23 = vld [vmem:[%s3347_s3 + $0xa0] ss:$16 sps:$4 sm:$0xff]   ;;  %v2893_v24 = vld [vmem:[%s3347_s3 + $0xa8] ss:$16 sps:$4 sm:$0xff]   ;;  %v2894_v25 = vld [vmem:[%s3347_s3 + $0xc4] ss:$16 sps:$4 sm:$0xff]  }
  0xa4   : > { %1291 = vmatpush1.bf16.msra.mxu1 %v2808_v31  ;;  %v2896_v26 = vld [vmem:[%s3347_s3 + $0xcc] ss:$16 sps:$4 sm:$0xff]   ;;  %v2898_v27 = vld [vmem:[%s3347_s3 + $0xc0] ss:$16 sps:$4 sm:$0xff]   ;;  %v2899_v28 = vld [vmem:[%s3347_s3 + $0xc8] ss:$16 sps:$4 sm:$0xff]  }
  0xa5   : > { %1564 = vmatpush1.bf16.msra.mxu0 %v2809_v32  ;;  %1292 = vmatprep.subr.bf16.mxu1 %v2810_v33  ;;  %v2900_v29 = vld [vmem:[%s3347_s3 + $0xe4] ss:$16 sps:$4 sm:$0xff]   ;;  %v2902_v30 = vld [vmem:[%s3347_s3 + $0xec] ss:$16 sps:$4 sm:$0xff]   ;;  %v2904_v31 = vld [vmem:[%s3347_s3 + $0xe0] ss:$16 sps:$4 sm:$0xff]  }
  0xa6   : > { %1565 = vmatprep.subr.bf16.mxu0 %v2812_v34  ;;  %v2905_v32 = vld [vmem:[%s3347_s3 + $0xe8] ss:$16 sps:$4 sm:$0xff]   ;;  %v2906_v33 = vld [vmem:[%s3347_s3 + $0x104] ss:$16 sps:$4 sm:$0xff]   ;;  %v2908_v34 = vld [vmem:[%s3347_s3 + $0x10c] ss:$16 sps:$4 sm:$0xff]  }
  0xa7   : > { %v2932_v50 = vld [vmem:[%s3347_s3 + $0x18c] ss:$16 sps:$4 sm:$0xff]   ;;  %v2935_v52 = vld [vmem:[%s3347_s3 + $0x188] ss:$16 sps:$4 sm:$0xff]  }
  0xa8   : > { %1293 = vmatpush1.bf16.msra.mxu1 %v2814_v35  ;;  %v2910_v35 = vld [vmem:[%s3347_s3 + $0x100] ss:$16 sps:$4 sm:$0xff]  }
  0xa9   : > { %1566 = vmatpush1.bf16.msra.mxu0 %v2815_v36  ;;  %1294 = vmatprep.subr.bf16.mxu1 %v2816_v37  ;;  %v2911_v36 = vld [vmem:[%s3347_s3 + $0x108] ss:$16 sps:$4 sm:$0xff]   ;;  %v2912_v37 = vld [vmem:[%s3347_s3 + $0x124] ss:$16 sps:$4 sm:$0xff]  }
  0xaa   : > { %1567 = vmatprep.subr.bf16.mxu0 %v2818_v38  ;;  %v2914_v38 = vld [vmem:[%s3347_s3 + $0x12c] ss:$16 sps:$4 sm:$0xff]  }
  0xac   : > { %1295 = vmatpush1.bf16.msra.mxu1 %v2820_v39  ;;  %v2916_v39 = vld [vmem:[%s3347_s3 + $0x120] ss:$16 sps:$4 sm:$0xff]  }
  0xad   : > { %1568 = vmatpush1.bf16.msra.mxu0 %v2821_v40  ;;  %1296 = vmatprep.subr.bf16.mxu1 %v2822_v41  ;;  %v2917_v40 = vld [vmem:[%s3347_s3 + $0x128] ss:$16 sps:$4 sm:$0xff]   ;;  %v2918_v41 = vld [vmem:[%s3347_s3 + $0x144] ss:$16 sps:$4 sm:$0xff]  }
  0xae   : > { %1569 = vmatprep.subr.bf16.mxu0 %v2824_v42  ;;  %v2920_v42 = vld [vmem:[%s3347_s3 + $0x14c] ss:$16 sps:$4 sm:$0xff]  }
  0xb0   : > { %1297 = vmatpush1.bf16.msra.mxu1 %v2826_v43  ;;  %v2922_v43 = vld [vmem:[%s3347_s3 + $0x140] ss:$16 sps:$4 sm:$0xff]  }
  0xb1   : > { %1570 = vmatpush1.bf16.msra.mxu0 %v2827_v44  ;;  %1298 = vmatprep.subr.bf16.mxu1 %v2828_v45  ;;  %v2923_v44 = vld [vmem:[%s3347_s3 + $0x148] ss:$16 sps:$4 sm:$0xff]   ;;  %v2924_v45 = vld [vmem:[%s3347_s3 + $0x164] ss:$16 sps:$4 sm:$0xff]  }
  0xb2   : > { %1571 = vmatprep.subr.bf16.mxu0 %v2830_v46  ;;  %v2926_v46 = vld [vmem:[%s3347_s3 + $0x16c] ss:$16 sps:$4 sm:$0xff]  }
  0xb4   : > { %1299 = vmatpush1.bf16.msra.mxu1 %v2832_v47  ;;  %v2928_v47 = vld [vmem:[%s3347_s3 + $0x160] ss:$16 sps:$4 sm:$0xff]  }
  0xb5   : > { %1572 = vmatpush1.bf16.msra.mxu0 %v2833_v48  ;;  %1300 = vmatprep.subr.bf16.mxu1 %v2834_v49  ;;  %v2929_v48 = vld [vmem:[%s3347_s3 + $0x168] ss:$16 sps:$4 sm:$0xff]   ;;  %v2930_v49 = vld [vmem:[%s3347_s3 + $0x184] ss:$16 sps:$4 sm:$0xff]  }
  0xb6   : > { %1573 = vmatprep.subr.bf16.mxu0 %v2836_v51  ;;  %v2934_v51 = vld [vmem:[%s3347_s3 + $0x180] ss:$16 sps:$4 sm:$0xff]  }
  0xb8   : > { %1301 = vmatpush1.bf16.msra.mxu1 %v2838_v53  ;;  %v2936_v53 = vld [vmem:[%s3347_s3 + $0x1a4] ss:$16 sps:$4 sm:$0xff]  }
  0xb9   : > { %1574 = vmatpush1.bf16.msra.mxu0 %v2839_v54  ;;  %1302 = vmatprep.subr.bf16.mxu1 %v2840_v55  ;;  %v2938_v54 = vld [vmem:[%s3347_s3 + $0x1ac] ss:$16 sps:$4 sm:$0xff]   ;;  %v2940_v55 = vld [vmem:[%s3347_s3 + $0x1a0] ss:$16 sps:$4 sm:$0xff]  }
  0xba   : > { %1575 = vmatprep.subr.bf16.mxu0 %v2842_v56  ;;  %v2941_v56 = vld [vmem:[%s3347_s3 + $0x1a8] ss:$16 sps:$4 sm:$0xff]  }
  0xbc   : > { %1303 = vmatpush1.bf16.msra.mxu1 %v2844_v57  ;;  %v2942_v57 = vld [vmem:[%s3347_s3 + $0x1c4] ss:$16 sps:$4 sm:$0xff]  }
  0xbd   : > { %1576 = vmatpush1.bf16.msra.mxu0 %v2845_v58  ;;  %1304 = vmatprep.subr.bf16.mxu1 %v2846_v59  ;;  %v2944_v58 = vld [vmem:[%s3347_s3 + $0x1cc] ss:$16 sps:$4 sm:$0xff]   ;;  %v2946_v59 = vld [vmem:[%s3347_s3 + $0x1c0] ss:$16 sps:$4 sm:$0xff]  }
  0xbe   : > { %1577 = vmatprep.subr.bf16.mxu0 %v2848_v60  ;;  %v2947_v60 = vld [vmem:[%s3347_s3 + $0x1c8] ss:$16 sps:$4 sm:$0xff]  }
  0xc0   : > { %1305 = vmatpush1.bf16.msra.mxu1 %v2850_v61  ;;  %v2948_v61 = vld [vmem:[%s3347_s3 + $0x1e4] ss:$16 sps:$4 sm:$0xff]  }
  0xc1   : > { %1578 = vmatpush1.bf16.msra.mxu0 %v2851_v62  ;;  %1306 = vmatprep.subr.bf16.mxu1 %v2852_v63  ;;  %v2950_v62 = vld [vmem:[%s3347_s3 + $0x1ec] ss:$16 sps:$4 sm:$0xff]   ;;  %v2952_v63 = vld [vmem:[%s3347_s3 + $0x1e0] ss:$16 sps:$4 sm:$0xff]  }
  0xc2   : > { %1579 = vmatprep.subr.bf16.mxu0 %v2854_v0  ;;  %v2953_v0 = vld [vmem:[%s3347_s3 + $0x1e8] ss:$16 sps:$4 sm:$0xff]  }
  0xc4   : > { %1307 = vmatpush1.bf16.msra.mxu1 %v2856_v1  ;;  %v2954_v1 = vld [vmem:[%s3347_s3 + $0x204] ss:$16 sps:$4 sm:$0xff]  }
  0xc5   : > { %1580 = vmatpush1.bf16.msra.mxu0 %v2857_v2  ;;  %v2956_v2 = vld [vmem:[%s3347_s3 + $0x20c] ss:$16 sps:$4 sm:$0xff]  }
  0xc7   : > { %1309 = vmatmul.mubr.bf16.vlgmr.msra.gmra.mrb[0].mxu1 %v2858_v3  ;;  %v2958_v3 = vld [vmem:[%s3347_s3 + $0x200] ss:$16 sps:$4 sm:$0xff]  }
  0xc8   : > { %1582 = vmatmul.mubr.bf16.vlgmr.msra.gmra.mrb[0].mxu0 %v2861_v4  ;;  %1318 = vmatprep.mubr.bf16.mxu1 %v2864_v5  ;;  %v2959_v4 = vld [vmem:[%s3347_s3 + $0x208] ss:$16 sps:$4 sm:$0xff]   ;;  %v2960_v5 = vld [vmem:[%s3347_s3 + $0x224] ss:$16 sps:$4 sm:$0xff]  }
  0xc9   : > { %1591 = vmatprep.mubr.bf16.mxu0 %v2866_v6  ;;  %v2962_v6 = vld [vmem:[%s3347_s3 + $0x22c] ss:$16 sps:$4 sm:$0xff]  }
  0xcf   : > { %1319 = vmatmul.mubr.bf16.gmra.mrb[4].mxu1 %v2868_v7  ;;  %v2964_v7 = vld [vmem:[%s3347_s3 + $0x220] ss:$16 sps:$4 sm:$0xff]  }
  0xd0   : > { %1592 = vmatmul.mubr.bf16.gmra.mrb[4].mxu0 %v2869_v8  ;;  %1328 = vmatprep.mubr.bf16.mxu1 %v2870_v9  ;;  %v2965_v8 = vld [vmem:[%s3347_s3 + $0x228] ss:$16 sps:$4 sm:$0xff]   ;;  %v2966_v9 = vld [vmem:[%s3347_s3 + $0x244] ss:$16 sps:$4 sm:$0xff]  }
  0xd1   : > { %1601 = vmatprep.mubr.bf16.mxu0 %v2872_v10  ;;  %v2968_v10 = vld [vmem:[%s3347_s3 + $0x24c] ss:$16 sps:$4 sm:$0xff]  }
  0xd7   : > { %1329 = vmatmul.mubr.bf16.gmra.mrb[8].mxu1 %v2874_v11  ;;  %v2970_v11 = vld [vmem:[%s3347_s3 + $0x240] ss:$16 sps:$4 sm:$0xff]  }
  0xd8   : > { %1602 = vmatmul.mubr.bf16.gmra.mrb[8].mxu0 %v2875_v12  ;;  %1338 = vmatprep.mubr.bf16.mxu1 %v2876_v13  ;;  %v2971_v12 = vld [vmem:[%s3347_s3 + $0x248] ss:$16 sps:$4 sm:$0xff]   ;;  %v2972_v13 = vld [vmem:[%s3347_s3 + $0x264] ss:$16 sps:$4 sm:$0xff]  }
  0xd9   : > { %1611 = vmatprep.mubr.bf16.mxu0 %v2878_v14  ;;  %v2974_v14 = vld [vmem:[%s3347_s3 + $0x26c] ss:$16 sps:$4 sm:$0xff]  }
  0xdf   : > { %1339 = vmatmul.mubr.bf16.gmra.mrb[12].mxu1 %v2880_v15  ;;  %v2976_v15 = vld [vmem:[%s3347_s3 + $0x260] ss:$16 sps:$4 sm:$0xff]  }
  0xe0   : > { %1612 = vmatmul.mubr.bf16.gmra.mrb[12].mxu0 %v2881_v16  ;;  %1348 = vmatprep.mubr.bf16.mxu1 %v2882_v17  ;;  %v2977_v16 = vld [vmem:[%s3347_s3 + $0x268] ss:$16 sps:$4 sm:$0xff]   ;;  %v2978_v17 = vld [vmem:[%s3347_s3 + $0x284] ss:$16 sps:$4 sm:$0xff]  }
  0xe1   : > { %1621 = vmatprep.mubr.bf16.mxu0 %v2884_v18  ;;  %v2980_v18 = vld [vmem:[%s3347_s3 + $0x28c] ss:$16 sps:$4 sm:$0xff]  }
  0xe7   : > { %1349 = vmatmul.mubr.bf16.gmra.mrb[16].mxu1 %v2886_v19  ;;  %v2982_v19 = vld [vmem:[%s3347_s3 + $0x280] ss:$16 sps:$4 sm:$0xff]  }
  0xe8   : > { %1622 = vmatmul.mubr.bf16.gmra.mrb[16].mxu0 %v2887_v20  ;;  %1358 = vmatprep.mubr.bf16.mxu1 %v2888_v21  ;;  %v2983_v20 = vld [vmem:[%s3347_s3 + $0x288] ss:$16 sps:$4 sm:$0xff]   ;;  %v2984_v21 = vld [vmem:[%s3347_s3 + $0x2a4] ss:$16 sps:$4 sm:$0xff]  }
  0xe9   : > { %1631 = vmatprep.mubr.bf16.mxu0 %v2890_v22  ;;  %v2986_v22 = vld [vmem:[%s3347_s3 + $0x2ac] ss:$16 sps:$4 sm:$0xff]  }
  0xef   : > { %1359 = vmatmul.mubr.bf16.gmra.mrb[20].mxu1 %v2892_v23  ;;  %v2988_v23 = vld [vmem:[%s3347_s3 + $0x2a0] ss:$16 sps:$4 sm:$0xff]  }
  0xf0   : > { %1632 = vmatmul.mubr.bf16.gmra.mrb[20].mxu0 %v2893_v24  ;;  %1368 = vmatprep.mubr.bf16.mxu1 %v2894_v25  ;;  %v2989_v24 = vld [vmem:[%s3347_s3 + $0x2a8] ss:$16 sps:$4 sm:$0xff]   ;;  %v2990_v25 = vld [vmem:[%s3347_s3 + $0x2c4] ss:$16 sps:$4 sm:$0xff]  }
  0xf1   : > { %1641 = vmatprep.mubr.bf16.mxu0 %v2896_v26  ;;  %v2992_v26 = vld [vmem:[%s3347_s3 + $0x2cc] ss:$16 sps:$4 sm:$0xff]  }
  0xf7   : > { %1369 = vmatmul.mubr.bf16.gmra.mrb[24].mxu1 %v2898_v27  ;;  %v2994_v27 = vld [vmem:[%s3347_s3 + $0x2c0] ss:$16 sps:$4 sm:$0xff]  }
  0xf8   : > { %1642 = vmatmul.mubr.bf16.gmra.mrb[24].mxu0 %v2899_v28  ;;  %1378 = vmatprep.mubr.bf16.mxu1 %v2900_v29  ;;  %v2995_v28 = vld [vmem:[%s3347_s3 + $0x2c8] ss:$16 sps:$4 sm:$0xff]   ;;  %v2996_v29 = vld [vmem:[%s3347_s3 + $0x2e4] ss:$16 sps:$4 sm:$0xff]  }
  0xf9   : > { %1651 = vmatprep.mubr.bf16.mxu0 %v2902_v30  ;;  %v2998_v30 = vld [vmem:[%s3347_s3 + $0x2ec] ss:$16 sps:$4 sm:$0xff]  }
  0xff   : > { %1379 = vmatmul.mubr.bf16.gmra.mrb[28].mxu1 %v2904_v31  ;;  %v3000_v31 = vld [vmem:[%s3347_s3 + $0x2e0] ss:$16 sps:$4 sm:$0xff]  }
 0x100   : > { %1652 = vmatmul.mubr.bf16.gmra.mrb[28].mxu0 %v2905_v32  ;;  %1388 = vmatprep.mubr.bf16.mxu1 %v2906_v33  ;;  %v3001_v32 = vld [vmem:[%s3347_s3 + $0x2e8] ss:$16 sps:$4 sm:$0xff]   ;;  %v1822_v33 = vlaneseq }
 0x101   : > { %1661 = vmatprep.mubr.bf16.mxu0 %v2908_v34 }
 0x102   : > { %v3460_v34 = vshrl.u32 %v1822_v33, 7 }
 0x107   : > { %1389 = vmatmul.mubr.bf16.gmra.mrb[32].mxu1 %v2910_v35  ;;  %v1824_v35 = vadd.s32 8, %v3460_v34 }
 0x108   : > { %1662 = vmatmul.mubr.bf16.gmra.mrb[32].mxu0 %v2911_v36  ;;  %1398 = vmatprep.mubr.bf16.mxu1 %v2912_v37  ;;  %v3464_v36 = vstv %s1847_s30 }
 0x109   : > { %1671 = vmatprep.mubr.bf16.mxu0 %v2914_v38  ;;  %v3468_v37 = vadd.s32 %v3464_v36, %v3460_v34  ;;  %v3471_v38 = vadd.s32 %v3464_v36, %v1824_v35 }
 0x10b   : > { %vm1873_vm0 = vcmp.lt.s32.totalorder %v3468_v37, 200  ;;  %vm1874_vm1 = vcmp.lt.s32.totalorder %v3471_v38, 200 }
 0x10f   : > { %1399 = vmatmul.mubr.bf16.gmra.mrb[36].mxu1 %v2916_v39 }
 0x110   : > { %1672 = vmatmul.mubr.bf16.gmra.mrb[36].mxu0 %v2917_v40  ;;  %1408 = vmatprep.mubr.bf16.mxu1 %v2918_v41  ;;  %v1825_v41 = vadd.s32 16, %v3460_v34 }
 0x111   : > { %1681 = vmatprep.mubr.bf16.mxu0 %v2920_v42 }
 0x117   : > { %1409 = vmatmul.mubr.bf16.gmra.mrb[40].mxu1 %v2922_v43 }
 0x118   : > { %1682 = vmatmul.mubr.bf16.gmra.mrb[40].mxu0 %v2923_v44  ;;  %1418 = vmatprep.mubr.bf16.mxu1 %v2924_v45 }
 0x119   : > { %1691 = vmatprep.mubr.bf16.mxu0 %v2926_v46 }
 0x11f   : > { %1419 = vmatmul.mubr.bf16.gmra.mrb[44].mxu1 %v2928_v47 }
 0x120   : > { %1692 = vmatmul.mubr.bf16.gmra.mrb[44].mxu0 %v2929_v48  ;;  %1428 = vmatprep.mubr.bf16.mxu1 %v2930_v49  ;;  %v1826_v48 = vadd.s32 24, %v3460_v34 }
 0x121   : > { %1701 = vmatprep.mubr.bf16.mxu0 %v2932_v50 }
 0x127   : > { %1429 = vmatmul.mubr.bf16.gmra.mrb[48].mxu1 %v2934_v51 }
 0x128   : > { %1702 = vmatmul.mubr.bf16.gmra.mrb[48].mxu0 %v2935_v52  ;;  %1438 = vmatprep.mubr.bf16.mxu1 %v2936_v53  ;;  %v3478_v53 = vadd.s32 %v3464_v36, %v1825_v41 }
 0x129   : > { %1711 = vmatprep.mubr.bf16.mxu0 %v2938_v54 }
 0x12a   : > { %vm1875_vm2 = vcmp.lt.s32.totalorder %v3478_v53, 200 }
 0x12f   : > { %1439 = vmatmul.mubr.bf16.gmra.mrb[52].mxu1 %v2940_v55 }
 0x130   : > { %1712 = vmatmul.mubr.bf16.gmra.mrb[52].mxu0 %v2941_v56  ;;  %1448 = vmatprep.mubr.bf16.mxu1 %v2942_v57 }
 0x131   : > { %1721 = vmatprep.mubr.bf16.mxu0 %v2944_v58 }
 0x137   : > { %1449 = vmatmul.mubr.bf16.gmra.mrb[56].mxu1 %v2946_v59  ;;  %v3489_v59 = vadd.s32 %v3464_v36, %v1826_v48 }
 0x138   : > { %1722 = vmatmul.mubr.bf16.gmra.mrb[56].mxu0 %v2947_v60  ;;  %1458 = vmatprep.mubr.bf16.mxu1 %v2948_v61 }
 0x139   : > { %1731 = vmatprep.mubr.bf16.mxu0 %v2950_v62  ;;  %vm1876_vm3 = vcmp.lt.s32.totalorder %v3489_v59, 200 }
 0x13f   : > { %1459 = vmatmul.mubr.bf16.gmra.mrb[60].mxu1 %v2952_v63  ;;  %v1827_v63 = vadd.s32 32, %v3460_v34 }
 0x140   : > { %1732 = vmatmul.mubr.bf16.gmra.mrb[60].mxu0 %v2953_v0  ;;  %1468 = vmatprep.mubr.bf16.mxu1 %v2954_v1 }
 0x141   : > { %1741 = vmatprep.mubr.bf16.mxu0 %v2956_v2 }
 0x147   : > { %1469 = vmatmul.mubr.bf16.gmra.mrb[64].mxu1 %v2958_v3 }
 0x148   : > { %1742 = vmatmul.mubr.bf16.gmra.mrb[64].mxu0 %v2959_v4  ;;  %1478 = vmatprep.mubr.bf16.mxu1 %v2960_v5 }
 0x149   : > { %1751 = vmatprep.mubr.bf16.mxu0 %v2962_v6  ;;  %v1828_v6 = vadd.s32 40, %v3460_v34 }
 0x14f   : > { %1479 = vmatmul.mubr.bf16.gmra.mrb[68].mxu1 %v2964_v7 }
 0x150   : > { %1752 = vmatmul.mubr.bf16.gmra.mrb[68].mxu0 %v2965_v8  ;;  %1488 = vmatprep.mubr.bf16.mxu1 %v2966_v9 }
 0x151   : > { %1761 = vmatprep.mubr.bf16.mxu0 %v2968_v10 }
 0x157   : > { %1489 = vmatmul.mubr.bf16.gmra.mrb[72].mxu1 %v2970_v11 }
 0x158   : > { %1762 = vmatmul.mubr.bf16.gmra.mrb[72].mxu0 %v2971_v12  ;;  %1498 = vmatprep.mubr.bf16.mxu1 %v2972_v13 }
 0x159   : > { %1771 = vmatprep.mubr.bf16.mxu0 %v2974_v14  ;;  %v3500_v14 = vadd.s32 %v3464_v36, %v1827_v63 }
 0x15b   : > { %vm1877_vm4 = vcmp.lt.s32.totalorder %v3500_v14, 200 }
 0x15f   : > { %1499 = vmatmul.mubr.bf16.gmra.mrb[76].mxu1 %v2976_v15 }
 0x160   : > { %1772 = vmatmul.mubr.bf16.gmra.mrb[76].mxu0 %v2977_v16  ;;  %1508 = vmatprep.mubr.bf16.mxu1 %v2978_v17 }
 0x161   : > { %1781 = vmatprep.mubr.bf16.mxu0 %v2980_v18 }
 0x167   : > { %1509 = vmatmul.mubr.bf16.gmra.mrb[80].mxu1 %v2982_v19  ;;  %v3507_v19 = vadd.s32 %v3464_v36, %v1828_v6 }
 0x168   : > { %1782 = vmatmul.mubr.bf16.gmra.mrb[80].mxu0 %v2983_v20  ;;  %1518 = vmatprep.mubr.bf16.mxu1 %v2984_v21 }
 0x169   : > { %1791 = vmatprep.mubr.bf16.mxu0 %v2986_v22  ;;  %vm1878_vm5 = vcmp.lt.s32.totalorder %v3507_v19, 200 }
 0x16f   : > { %1519 = vmatmul.mubr.bf16.gmra.mrb[84].mxu1 %v2988_v23  ;;  %v1829_v23 = vadd.s32 48, %v3460_v34 }
 0x170   : > { %1792 = vmatmul.mubr.bf16.gmra.mrb[84].mxu0 %v2989_v24  ;;  %1528 = vmatprep.mubr.bf16.mxu1 %v2990_v25 }
 0x171   : > { %1801 = vmatprep.mubr.bf16.mxu0 %v2992_v26 }
 0x177   : > { %1529 = vmatmul.mubr.bf16.gmra.mrb[88].mxu1 %v2994_v27 }
 0x178   : > { %1802 = vmatmul.mubr.bf16.gmra.mrb[88].mxu0 %v2995_v28  ;;  %1538 = vmatprep.mubr.bf16.mxu1 %v2996_v29 }
 0x179   : > { %1811 = vmatprep.mubr.bf16.mxu0 %v2998_v30  ;;  %v1830_v30 = vadd.s32 56, %v3460_v34 }
 0x17f   : > { %1539 = vmatmul.mubr.bf16.gmra.mrb[92].mxu1 %v3000_v31 }
 0x180   : > { %1812 = vmatmul.mubr.bf16.gmra.mrb[92].mxu0 %v3001_v32 }
 0x19a   : > { %v1310_v39 = vpop.f32.mrb[0].mxu1 }
 0x19b   : > { %v1583_v40 = vpop.f32.mrb[0].mxu0  ;;  %v1312_v43 = vpop.f32.mrb[1].mxu1 }
 0x19c   : > { %v1584_v42 = vadd.f32 %v1583_v40, %v1310_v39  ;;  %v1585_v44 = vpop.f32.mrb[1].mxu0  ;;  %v1314_v46 = vpop.f32.mrb[2].mxu1 }
 0x19d   : > { %v1586_v45 = vadd.f32 %v1585_v44, %v1312_v43  ;;  %v1587_v47 = vpop.f32.mrb[2].mxu0  ;;  %v1316_v50 = vpop.f32.mrb[3].mxu1 }
 0x19e   : > { %v1588_v49 = vadd.f32 %v1587_v47, %v1314_v46  ;;  %v1589_v51 = vpop.f32.mrb[3].mxu0  ;;  %v1945_v54 = vsel %vm1873_vm0, %v1584_v42, -inf  ;;  %v3518_v42 = vadd.s32 %v3464_v36, %v1829_v23  ;;  %v3525_v47 = vadd.s32 %v3464_v36, %v1830_v30 }
 0x19f   : > { %v1590_v52 = vadd.f32 %v1589_v51, %v1316_v50  ;;  %v1946_v56 = vsel %vm1873_vm0, %v1586_v45, -inf  ;;  %v1831_v51 = vadd.s32 64, %v3460_v34 }
 0x1a0   : > { %v1947_v55 = vsel %vm1874_vm1, %v1588_v49, -inf  ;;  %vm1879_vm6 = vcmp.lt.s32.totalorder %v3518_v42, 200  ;;  %vm1880_vm7 = vcmp.lt.s32.totalorder %v3525_v47, 200 }
 0x1a1   : > { %v2045_v57 = vmax.f32 %v1945_v54, %v1947_v55  ;;  %v1948_v58 = vsel %vm1874_vm1, %v1590_v52, -inf }
 0x1a2   : > { %v2068_v60 = vmax.f32 %v1946_v56, %v1948_v58  ;;  %v1320_v61 = vpop.f32.mrb[4].mxu1 }
 0x1a3   : > { %v1593_v62 = vpop.f32.mrb[4].mxu0  ;;  %v1322_v1 = vpop.f32.mrb[5].mxu1 }
 0x1a4   : > { %v1594_v0 = vadd.f32 %v1593_v62, %v1320_v61  ;;  %v1595_v2 = vpop.f32.mrb[5].mxu0  ;;  %v1324_v4 = vpop.f32.mrb[6].mxu1 }
 0x1a5   : > { %v1596_v3 = vadd.f32 %v1595_v2, %v1322_v1  ;;  %v1597_v5 = vpop.f32.mrb[6].mxu0  ;;  %v1326_v9 = vpop.f32.mrb[7].mxu1 }
 0x1a6   : > { %v1949_v7 = vsel %vm1875_vm2, %v1594_v0, -inf  ;;  %v1598_v8 = vadd.f32 %v1597_v5, %v1324_v4  ;;  %v1599_v10 = vpop.f32.mrb[7].mxu0  ;;  %v3536_v4 = vadd.s32 %v3464_v36, %v1831_v51 }
 0x1a7   : > { %v2046_v11 = vmax.f32 %v2045_v57, %v1949_v7  ;;  %v1950_v12 = vsel %vm1875_vm2, %v1596_v3, -inf  ;;  %v1600_v13 = vadd.f32 %v1599_v10, %v1326_v9 }
 0x1a8   : > { %v2069_v15 = vmax.f32 %v2068_v60, %v1950_v12  ;;  %v1951_v16 = vsel %vm1876_vm3, %v1598_v8, -inf  ;;  %v1832_v60 = vadd.s32 72, %v3460_v34  ;;  %vm1881_vm8 = vcmp.lt.s32.totalorder %v3536_v4, 200 }
 0x1a9   : > { %v2047_v17 = vmax.f32 %v2046_v11, %v1951_v16  ;;  %v1952_v18 = vsel %vm1876_vm3, %v1600_v13, -inf  ;;  %v1833_v13 = vadd.s32 80, %v3460_v34 }
 0x1aa   : > { %v2070_v20 = vmax.f32 %v2069_v15, %v1952_v18  ;;  %v1330_v21 = vpop.f32.mrb[8].mxu1  ;;  %v3543_v9 = vadd.s32 %v3464_v36, %v1832_v60 }
 0x1ab   : > { %v1603_v22 = vpop.f32.mrb[8].mxu0  ;;  %v1332_v25 = vpop.f32.mrb[9].mxu1  ;;  %v3554_v30 = vadd.s32 %v3464_v36, %v1833_v13 }
 0x1ac   : > { %v1604_v24 = vadd.f32 %v1603_v22, %v1330_v21  ;;  %v1605_v26 = vpop.f32.mrb[9].mxu0  ;;  %v1334_v28 = vpop.f32.mrb[10].mxu1  ;;  %vm1882_vm9 = vcmp.lt.s32.totalorder %v3543_v9, 200  ;;  %v1834_v22 = vadd.s32 88, %v3460_v34 }
 0x1ad   : > { %v1606_v27 = vadd.f32 %v1605_v26, %v1332_v25  ;;  %v1607_v29 = vpop.f32.mrb[10].mxu0  ;;  %v1336_v33 = vpop.f32.mrb[11].mxu1  ;;  %vm1883_vm10 = vcmp.lt.s32.totalorder %v3554_v30, 200 }
 0x1ae   : > { %v1953_v31 = vsel %vm1877_vm4, %v1604_v24, -inf  ;;  %v1608_v32 = vadd.f32 %v1607_v29, %v1334_v28  ;;  %v1609_v35 = vpop.f32.mrb[11].mxu0 }
 0x1af   : > { %v2048_v39 = vmax.f32 %v2047_v17, %v1953_v31  ;;  %v1954_v40 = vsel %vm1877_vm4, %v1606_v27, -inf  ;;  %v1610_v41 = vadd.f32 %v1609_v35, %v1336_v33 }
 0x1b0   : > { %v2071_v43 = vmax.f32 %v2070_v20, %v1954_v40  ;;  %v1955_v44 = vsel %vm1878_vm5, %v1608_v32, -inf }
 0x1b1   : > { %v2049_v45 = vmax.f32 %v2048_v39, %v1955_v44  ;;  %v1956_v46 = vsel %vm1878_vm5, %v1610_v41, -inf  ;;  %v3561_v39 = vadd.s32 %v3464_v36, %v1834_v22  ;;  %v1835_v44 = vadd.s32 96, %v3460_v34 }
 0x1b2   : > { %v2072_v48 = vmax.f32 %v2071_v43, %v1956_v46  ;;  %v1340_v49 = vpop.f32.mrb[12].mxu1 }
 0x1b3   : > { %v1613_v50 = vpop.f32.mrb[12].mxu0  ;;  %v1342_v54 = vpop.f32.mrb[13].mxu1  ;;  %vm1884_vm11 = vcmp.lt.s32.totalorder %v3561_v39, 200 }
 0x1b4   : > { %v1614_v52 = vadd.f32 %v1613_v50, %v1340_v49  ;;  %v1615_v55 = vpop.f32.mrb[13].mxu0  ;;  %v1344_v57 = vpop.f32.mrb[14].mxu1 }
 0x1b5   : > { %v1616_v56 = vadd.f32 %v1615_v55, %v1342_v54  ;;  %v1617_v58 = vpop.f32.mrb[14].mxu0  ;;  %v1346_v63 = vpop.f32.mrb[15].mxu1 }
 0x1b6   : > { %v1957_v61 = vsel %vm1879_vm6, %v1614_v52, -inf  ;;  %v1618_v62 = vadd.f32 %v1617_v58, %v1344_v57  ;;  %v1619_v0 = vpop.f32.mrb[15].mxu0  ;;  %v1836_v52 = vadd.s32 104, %v3460_v34 }
 0x1b7   : > { %v2050_v1 = vmax.f32 %v2049_v45, %v1957_v61  ;;  %v1958_v2 = vsel %vm1879_vm6, %v1616_v56, -inf  ;;  %v1620_v3 = vadd.f32 %v1619_v0, %v1346_v63 }
 0x1b8   : > { %v2073_v5 = vmax.f32 %v2072_v48, %v1958_v2  ;;  %v1959_v6 = vsel %vm1880_vm7, %v1618_v62, -inf  ;;  %v3572_v62 = vadd.s32 %v3464_v36, %v1835_v44 }
 0x1b9   : > { %v2051_v7 = vmax.f32 %v2050_v1, %v1959_v6  ;;  %v1960_v8 = vsel %vm1880_vm7, %v1620_v3, -inf  ;;  %v3579_v3 = vadd.s32 %v3464_v36, %v1836_v52 }
 0x1ba   : > { %v2074_v10 = vmax.f32 %v2073_v5, %v1960_v8  ;;  %v1350_v11 = vpop.f32.mrb[16].mxu1  ;;  %vm1885_vm12 = vcmp.lt.s32.totalorder %v3572_v62, 200  ;;  %v1837_v8 = vadd.s32 112, %v3460_v34 }
 0x1bb   : > { %v1623_v12 = vpop.f32.mrb[16].mxu0  ;;  %v1352_v16 = vpop.f32.mrb[17].mxu1  ;;  %vm3872_vm13 = vcmp.lt.s32.totalorder %v3579_v3, 200 }
 0x1bc   : > { %v1624_v15 = vadd.f32 %v1623_v12, %v1350_v11  ;;  %v1625_v17 = vpop.f32.mrb[17].mxu0  ;;  %v1354_v20 = vpop.f32.mrb[18].mxu1 }
 0x1bd   : > { %v1626_v18 = vadd.f32 %v1625_v17, %v1352_v16  ;;  %v1627_v21 = vpop.f32.mrb[18].mxu0  ;;  %v1356_v25 = vpop.f32.mrb[19].mxu1  ;;  %v1838_v17 = vadd.s32 120, %v3460_v34 }
 0x1be   : > { %v1961_v23 = vsel %vm1881_vm8, %v1624_v15, -inf  ;;  %v1628_v24 = vadd.f32 %v1627_v21, %v1354_v20  ;;  %v1629_v26 = vpop.f32.mrb[19].mxu0 }
 0x1bf   : > { %v2052_v27 = vmax.f32 %v2051_v7, %v1961_v23  ;;  %v1962_v28 = vsel %vm1881_vm8, %v1626_v18, -inf  ;;  %v1630_v29 = vadd.f32 %v1629_v26, %v1356_v25  ;;  %v3590_v26 = vadd.s32 %v3464_v36, %v1837_v8 }
 0x1c0   : > { %v2075_v31 = vmax.f32 %v2074_v10, %v1962_v28  ;;  %v1963_v32 = vsel %vm1882_vm9, %v1628_v24, -inf  ;;  %v1841_v8 = vadd.s32 144, %v3460_v34 }
 0x1c1   : > { %v2053_v33 = vmax.f32 %v2052_v27, %v1963_v32  ;;  %v1964_v35 = vsel %vm1882_vm9, %v1630_v29, -inf  ;;  %v3597_v32 = vadd.s32 %v3464_v36, %v1838_v17  ;;  %vm3871_vm14 = vcmp.lt.s32.totalorder %v3590_v26, 200 }
 0x1c2   : > { %v2076_v40 = vmax.f32 %v2075_v31, %v1964_v35  ;;  %v1360_v41 = vpop.f32.mrb[20].mxu1  ;;  %v1842_v17 = vadd.s32 152, %v3460_v34 }
 0x1c3   : > { %v1633_v43 = vpop.f32.mrb[20].mxu0  ;;  %v1362_v46 = vpop.f32.mrb[21].mxu1  ;;  %vm3874_vm15 = vcmp.lt.s32.totalorder %v3597_v32, 200 }
 0x1c4   : > { %v1634_v45 = vadd.f32 %v1633_v43, %v1360_v41  ;;  %v1635_v48 = vpop.f32.mrb[21].mxu0  ;;  %v1364_v50 = vpop.f32.mrb[22].mxu1  ;;  %v1839_v41 = vadd.s32 128, %v3460_v34 }
 0x1c5   : > { %v1636_v49 = vadd.f32 %v1635_v48, %v1362_v46  ;;  %v1637_v51 = vpop.f32.mrb[22].mxu0  ;;  %v1366_v56 = vpop.f32.mrb[23].mxu1 }
 0x1c6   : > { %v1965_v54 = vsel %vm1883_vm10, %v1634_v45, -inf  ;;  %v1638_v55 = vadd.f32 %v1637_v51, %v1364_v50  ;;  %v1639_v57 = vpop.f32.mrb[23].mxu0  ;;  %v1840_v50 = vadd.s32 136, %v3460_v34 }
 0x1c7   : > { %v2054_v58 = vmax.f32 %v2053_v33, %v1965_v54  ;;  %v1966_v60 = vsel %vm1883_vm10, %v1636_v49, -inf  ;;  %v1640_v61 = vadd.f32 %v1639_v57, %v1366_v56 }
 0x1c8   : > { %v2077_v63 = vmax.f32 %v2076_v40, %v1966_v60  ;;  %v1967_v0 = vsel %vm1884_vm11, %v1638_v55, -inf  ;;  %v3608_v60 = vadd.s32 %v3464_v36, %v1839_v41 }
 0x1c9   : > { %v2055_v1 = vmax.f32 %v2054_v58, %v1967_v0  ;;  %v1968_v2 = vsel %vm1884_vm11, %v1640_v61, -inf }
 0x1ca   : > { %v2078_v5 = vmax.f32 %v2077_v63, %v1968_v2  ;;  %v1370_v6 = vpop.f32.mrb[24].mxu1  ;;  %v3615_v2 = vadd.s32 %v3464_v36, %v1840_v50 }
 0x1cb   : > { %v1643_v7 = vpop.f32.mrb[24].mxu0  ;;  %v1372_v11 = vpop.f32.mrb[25].mxu1 }
 0x1cc   : > { %v1644_v10 = vadd.f32 %v1643_v7, %v1370_v6  ;;  %v1645_v12 = vpop.f32.mrb[25].mxu0  ;;  %v1374_v15 = vpop.f32.mrb[26].mxu1 }
 0x1cd   : > { %v1646_v13 = vadd.f32 %v1645_v12, %v1372_v11  ;;  %v1647_v16 = vpop.f32.mrb[26].mxu0  ;;  %v1376_v21 = vpop.f32.mrb[27].mxu1 }
 0x1ce   : > { %v1969_v18 = vsel %vm1885_vm12, %v1644_v10, -inf  ;;  %v1648_v20 = vadd.f32 %v1647_v16, %v1374_v15  ;;  %v1649_v22 = vpop.f32.mrb[27].mxu0 }
 0x1cf   : > { %v2056_v23 = vmax.f32 %v2055_v1, %v1969_v18  ;;  %v1970_v24 = vsel %vm1885_vm12, %v1646_v13, -inf  ;;  %v1650_v25 = vadd.f32 %v1649_v22, %v1376_v21 }
 0x1d0   : > { %v2079_v27 = vmax.f32 %v2078_v5, %v1970_v24  ;;  %v1971_v28 = vsel %vm3872_vm13, %v1648_v20, -inf }
 0x1d1   : > { %v2057_v29 = vmax.f32 %v2056_v23, %v1971_v28  ;;  %v1972_v31 = vsel %vm3872_vm13, %v1650_v25, -inf  ;;  %vm3876_vm13 = vcmp.lt.s32.totalorder %v3615_v2, 200 }
 0x1d2   : > { %v2080_v33 = vmax.f32 %v2079_v27, %v1972_v31  ;;  %v1380_v35 = vpop.f32.mrb[28].mxu1  ;;  %v3626_v27 = vadd.s32 %v3464_v36, %v1841_v8 }
 0x1d3   : > { %v1653_v40 = vpop.f32.mrb[28].mxu0  ;;  %v1382_v44 = vpop.f32.mrb[29].mxu1 }
 0x1d4   : > { %v1654_v43 = vadd.f32 %v1653_v40, %v1380_v35  ;;  %v1655_v45 = vpop.f32.mrb[29].mxu0  ;;  %v1384_v48 = vpop.f32.mrb[30].mxu1  ;;  %v3633_v35 = vadd.s32 %v3464_v36, %v1842_v17 }
 0x1d5   : > { %v1656_v46 = vadd.f32 %v1655_v45, %v1382_v44  ;;  %v1657_v49 = vpop.f32.mrb[30].mxu0  ;;  %v1386_v54 = vpop.f32.mrb[31].mxu1  ;;  %v1843_v44 = vadd.s32 160, %v3460_v34 }
 0x1d6   : > { %v1973_v51 = vsel %vm3871_vm14, %v1654_v43, -inf  ;;  %v1658_v52 = vadd.f32 %v1657_v49, %v1384_v48  ;;  %v1659_v55 = vpop.f32.mrb[31].mxu0 }
 0x1d7   : > { %v2058_v56 = vmax.f32 %v2057_v29, %v1973_v51  ;;  %v1974_v57 = vsel %vm3871_vm14, %v1656_v46, -inf  ;;  %v1660_v58 = vadd.f32 %v1659_v55, %v1386_v54  ;;  %vm3873_vm14 = vcmp.lt.s32.totalorder %v3608_v60, 200 }
 0x1d8   : > { %v2081_v61 = vmax.f32 %v2080_v33, %v1974_v57  ;;  %v1975_v63 = vsel %vm3874_vm15, %v1658_v52, -inf  ;;  %v1844_v52 = vadd.s32 168, %v3460_v34 }
 0x1d9   : > { %v2059_v0 = vmax.f32 %v2058_v56, %v1975_v63  ;;  %v1976_v1 = vsel %vm3874_vm15, %v1660_v58, -inf  ;;  %vm3878_vm15 = vcmp.lt.s32.totalorder %v3633_v35, 200 }
 0x1da   : > { %v2082_v5 = vmax.f32 %v2081_v61, %v1976_v1  ;;  %v1390_v6 = vpop.f32.mrb[32].mxu1  ;;  %v3651_v8 = vadd.s32 %v3464_v36, %v1844_v52 }
 0x1db   : > { %v1663_v7 = vpop.f32.mrb[32].mxu0  ;;  %v1392_v11 = vpop.f32.mrb[33].mxu1 }
 0x1dc   : > { %v1664_v10 = vadd.f32 %v1663_v7, %v1390_v6  ;;  %v1665_v12 = vpop.f32.mrb[33].mxu0  ;;  %v1394_v15 = vpop.f32.mrb[34].mxu1 }
 0x1dd   : > { %v1666_v13 = vadd.f32 %v1665_v12, %v1392_v11  ;;  %v1667_v16 = vpop.f32.mrb[34].mxu0  ;;  %v1396_v21 = vpop.f32.mrb[35].mxu1 }
 0x1de   : > { %v1977_v18 = vsel %vm3873_vm14, %v1664_v10, -inf  ;;  %v1668_v20 = vadd.f32 %v1667_v16, %v1394_v15  ;;  %v1669_v22 = vpop.f32.mrb[35].mxu0 }
 0x1df   : > { %v2060_v23 = vmax.f32 %v2059_v0, %v1977_v18  ;;  %v1978_v24 = vsel %vm3873_vm14, %v1666_v13, -inf  ;;  %v1670_v25 = vadd.f32 %v1669_v22, %v1396_v21  ;;  %vm3875_vm14 = vcmp.lt.s32.totalorder %v3626_v27, 200 }
 0x1e0   : > { %v2083_v28 = vmax.f32 %v2082_v5, %v1978_v24  ;;  %v1979_v29 = vsel %vm3876_vm13, %v1668_v20, -inf  ;;  %v3644_v0 = vadd.s32 %v3464_v36, %v1843_v44  ;;  %v1845_v13 = vadd.s32 176, %v3460_v34 }
 0x1e1   : > { %v2061_v31 = vmax.f32 %v2060_v23, %v1979_v29  ;;  %v1980_v33 = vsel %vm3876_vm13, %v1670_v25, -inf  ;;  %vm1894_vm13 = vcmp.lt.s32.totalorder %v3651_v8, 200  ;;  %v1846_v22 = vadd.s32 184, %v3460_v34 }
 0x1e2   : > { %v2084_v40 = vmax.f32 %v2083_v28, %v1980_v33  ;;  %v1400_v41 = vpop.f32.mrb[36].mxu1 }
 0x1e3   : > { %v1673_v43 = vpop.f32.mrb[36].mxu0  ;;  %v1402_v46 = vpop.f32.mrb[37].mxu1 }
 0x1e4   : > { %v1674_v45 = vadd.f32 %v1673_v43, %v1400_v41  ;;  %v1675_v48 = vpop.f32.mrb[37].mxu0  ;;  %v1404_v50 = vpop.f32.mrb[38].mxu1 }
 0x1e5   : > { %v1676_v49 = vadd.f32 %v1675_v48, %v1402_v46  ;;  %v1677_v51 = vpop.f32.mrb[38].mxu0  ;;  %v1406_v56 = vpop.f32.mrb[39].mxu1  ;;  %v3669_v46 = vadd.s32 %v3464_v36, %v1846_v22 }
 0x1e6   : > { %v1981_v54 = vsel %vm3875_vm14, %v1674_v45, -inf  ;;  %v1678_v55 = vadd.f32 %v1677_v51, %v1404_v50  ;;  %v1679_v57 = vpop.f32.mrb[39].mxu0 }
 0x1e7   : > { %v2062_v58 = vmax.f32 %v2061_v31, %v1981_v54  ;;  %v1982_v61 = vsel %vm3875_vm14, %v1676_v49, -inf  ;;  %v1680_v63 = vadd.f32 %v1679_v57, %v1406_v56  ;;  %vm3877_vm14 = vcmp.lt.s32.totalorder %v3644_v0, 200 }
 0x1e8   : > { %v2085_v1 = vmax.f32 %v2084_v40, %v1982_v61  ;;  %v1983_v5 = vsel %vm3878_vm15, %v1678_v55, -inf  ;;  %v3662_v40 = vadd.s32 %v3464_v36, %v1845_v13 }
 0x1e9   : > { %v2063_v6 = vmax.f32 %v2062_v58, %v1983_v5  ;;  %v1984_v7 = vsel %vm3878_vm15, %v1680_v63, -inf  ;;  %vm1896_vm15 = vcmp.lt.s32.totalorder %v3669_v46, 200 }
 0x1ea   : > { %v2086_v10 = vmax.f32 %v2085_v1, %v1984_v7  ;;  %v1410_v11 = vpop.f32.mrb[40].mxu1 }
 0x1eb   : > { %v1683_v12 = vpop.f32.mrb[40].mxu0  ;;  %v1412_v16 = vpop.f32.mrb[41].mxu1 }
 0x1ec   : > { %v1684_v15 = vadd.f32 %v1683_v12, %v1410_v11  ;;  %v1685_v17 = vpop.f32.mrb[41].mxu0  ;;  %v1414_v20 = vpop.f32.mrb[42].mxu1  ;;  %v2041_v11 = vld [vmem:[#allocation2] sm:$0xff] }
 0x1ed   : > { %v1686_v18 = vadd.f32 %v1685_v17, %v1412_v16  ;;  %v1687_v21 = vpop.f32.mrb[42].mxu0  ;;  %v1416_v25 = vpop.f32.mrb[43].mxu1 }
 0x1ee   : > { %v1985_v23 = vsel %vm3877_vm14, %v1684_v15, -inf  ;;  %v1688_v24 = vadd.f32 %v1687_v21, %v1414_v20  ;;  %v1689_v28 = vpop.f32.mrb[43].mxu0  ;;  %v2042_v15 = vld [vmem:[#allocation2 + $0x8] sm:$0xff] }
 0x1ef   : > { %v2064_v29 = vmax.f32 %v2063_v6, %v1985_v23  ;;  %v1986_v31 = vsel %vm3877_vm14, %v1686_v18, -inf  ;;  %v1690_v33 = vadd.f32 %v1689_v28, %v1416_v25  ;;  %vm1895_vm14 = vcmp.lt.s32.totalorder %v3662_v40, 200 }
 0x1f0   : > { %v2087_v41 = vmax.f32 %v2086_v10, %v1986_v31  ;;  %v1987_v43 = vsel %vm1894_vm13, %v1688_v24, -inf }
 0x1f1   : > { %v2065_v44 = vmax.f32 %v2064_v29, %v1987_v43  ;;  %v1988_v45 = vsel %vm1894_vm13, %v1690_v33, -inf }
 0x1f2   : > { %v2088_v48 = vmax.f32 %v2087_v41, %v1988_v45  ;;  %v1420_v49 = vpop.f32.mrb[44].mxu1 }
 0x1f3   : > { %v1693_v50 = vpop.f32.mrb[44].mxu0  ;;  %v1422_v52 = vpop.f32.mrb[45].mxu1 }
 0x1f4   : > { %v1694_v51 = vadd.f32 %v1693_v50, %v1420_v49  ;;  %v1695_v54 = vpop.f32.mrb[45].mxu0  ;;  %v1424_v56 = vpop.f32.mrb[46].mxu1 }
 0x1f5   : > { %v1696_v55 = vadd.f32 %v1695_v54, %v1422_v52  ;;  %v1697_v57 = vpop.f32.mrb[46].mxu0  ;;  %v1426_v63 = vpop.f32.mrb[47].mxu1 }
 0x1f6   : > { %v1989_v58 = vsel %vm1895_vm14, %v1694_v51, -inf  ;;  %v1698_v61 = vadd.f32 %v1697_v57, %v1424_v56  ;;  %v1699_v36 = vpop.f32.mrb[47].mxu0 }
 0x1f7   : > { %v2066_v1 = vmax.f32 %v2065_v44, %v1989_v58  ;;  %v1990_v5 = vsel %vm1895_vm14, %v1696_v55, -inf  ;;  %v1700_v6 = vadd.f32 %v1699_v36, %v1426_v63 }
 0x1f8   : > { %v2089_v7 = vmax.f32 %v2088_v48, %v1990_v5  ;;  %v1991_v10 = vsel %vm1896_vm15, %v1698_v61, -inf }
 0x1f9   : > { %v2067_v12 = vmax.f32 %v2066_v1, %v1991_v10  ;;  %v1992_v13 = vsel %vm1896_vm15, %v1700_v6, -inf }
 0x1fa   : > { %v2090_v16 = vmax.f32 %v2089_v7, %v1992_v13  ;;  %v1430_v18 = vpop.f32.mrb[48].mxu1 }
 0x1fb   : > { %v2137_v17 = vmax.f32 %v2041_v11, %v2067_v12  ;;  %v1703_v20 = vpop.f32.mrb[48].mxu0  ;;  %v1432_v23 = vpop.f32.mrb[49].mxu1 }
 0x1fc   : > { %v2138_v21 = vmax.f32 %v2042_v15, %v2090_v16  ;;  %v1704_v22 = vadd.f32 %v1703_v20, %v1430_v18  ;;  %v1705_v24 = vpop.f32.mrb[49].mxu0  ;;  %v1434_v28 = vpop.f32.mrb[50].mxu1 }
 0x1fd   : > { %2141 = vst [vmem:[#allocation2] sm:$0xff] %v2137_v17  ;;  %v1706_v25 = vadd.f32 %v1705_v24, %v1432_v23  ;;  %v1707_v29 = vpop.f32.mrb[50].mxu0  ;;  %v1436_v33 = vpop.f32.mrb[51].mxu1 }
 0x1fe   : > { %2142 = vst [vmem:[#allocation2 + $0x8] sm:$0xff] %v2138_v21  ;;  %v1708_v31 = vadd.f32 %v1707_v29, %v1434_v28  ;;  %v1709_v41 = vpop.f32.mrb[51].mxu0  ;;  %v1993_v44 = vsel %vm1873_vm0, %v1704_v22, -inf }
 0x1ff   : > { %v1710_v43 = vadd.f32 %v1709_v41, %v1436_v33  ;;  %v1994_v48 = vsel %vm1873_vm0, %v1706_v25, -inf  ;;  %vm3905_vm0 = vcmp.lt.s32.totalorder %v3579_v3, 200 }
 0x200   : > { %v1995_v45 = vsel %vm1874_vm1, %v1708_v31, -inf }
 0x201   : > { %v2091_v49 = vmax.f32 %v1993_v44, %v1995_v45  ;;  %v1996_v50 = vsel %vm1874_vm1, %v1710_v43, -inf  ;;  %vm3906_vm1 = vmmov %vm3905_vm0 }
 0x202   : > { %v2114_v51 = vmax.f32 %v1994_v48, %v1996_v50  ;;  %v1440_v52 = vpop.f32.mrb[52].mxu1 }
 0x203   : > { %v1713_v54 = vpop.f32.mrb[52].mxu0  ;;  %v1442_v56 = vpop.f32.mrb[53].mxu1 }
 0x204   : > { %v1714_v55 = vadd.f32 %v1713_v54, %v1440_v52  ;;  %v1715_v57 = vpop.f32.mrb[53].mxu0  ;;  %v1444_v61 = vpop.f32.mrb[54].mxu1  ;;  %v2149_v40 = vld [vmem:[#allocation2] sm:$0xff] (!%p2539_p11) }
 0x205   : > { %v1716_v58 = vadd.f32 %v1715_v57, %v1442_v56  ;;  %v1717_v63 = vpop.f32.mrb[54].mxu0  ;;  %v1446_v5 = vpop.f32.mrb[55].mxu1 }
 0x206   : > { %v1997_v36 = vsel %vm1875_vm2, %v1714_v55, -inf  ;;  %v1718_v1 = vadd.f32 %v1717_v63, %v1444_v61  ;;  %v1719_v37 = vpop.f32.mrb[55].mxu0 }
 0x207   : > { %v2092_v6 = vmax.f32 %v2091_v49, %v1997_v36  ;;  %v1998_v38 = vsel %vm1875_vm2, %v1716_v58, -inf  ;;  %v1720_v7 = vadd.f32 %v1719_v37, %v1446_v5  ;;  %vm3907_vm2 = vcmp.lt.s32.totalorder %v3590_v26, 200 }
 0x208   : > { %v2115_v10 = vmax.f32 %v2114_v51, %v1998_v38  ;;  %v1999_v11 = vsel %vm1876_vm3, %v1718_v1, -inf }
 0x209   : > { %v2093_v12 = vmax.f32 %v2092_v6, %v1999_v11  ;;  %v2000_v13 = vsel %vm1876_vm3, %v1720_v7, -inf  ;;  %vm3908_vm3 = vmmov %vm3907_vm2 }
 0x20a   : > { %v2116_v15 = vmax.f32 %v2115_v10, %v2000_v13  ;;  %v1450_v16 = vpop.f32.mrb[56].mxu1 }
 0x20b   : > { %v1723_v17 = vpop.f32.mrb[56].mxu0  ;;  %v1452_v20 = vpop.f32.mrb[57].mxu1 }
 0x20c   : > { %v1724_v18 = vadd.f32 %v1723_v17, %v1450_v16  ;;  %v1725_v21 = vpop.f32.mrb[57].mxu0  ;;  %v1454_v23 = vpop.f32.mrb[58].mxu1 }
 0x20d   : > { %v1726_v22 = vadd.f32 %v1725_v21, %v1452_v20  ;;  %v1727_v24 = vpop.f32.mrb[58].mxu0  ;;  %v1456_v28 = vpop.f32.mrb[59].mxu1 }
 0x20e   : > { %v2001_v53 = vsel %vm1877_vm4, %v1724_v18, -inf  ;;  %v1728_v25 = vadd.f32 %v1727_v24, %v1454_v23  ;;  %v1729_v29 = vpop.f32.mrb[59].mxu0 }
 0x20f   : > { %v2094_v31 = vmax.f32 %v2093_v12, %v2001_v53  ;;  %v2002_v59 = vsel %vm1877_vm4, %v1726_v22, -inf  ;;  %v1730_v33 = vadd.f32 %v1729_v29, %v1456_v28  ;;  %vm3909_vm4 = vcmp.lt.s32.totalorder %v3597_v32, 200 }
 0x210   : > { %v2117_v41 = vmax.f32 %v2116_v15, %v2002_v59  ;;  %v2003_v43 = vsel %vm1878_vm5, %v1728_v25, -inf }
 0x211   : > { %v2095_v44 = vmax.f32 %v2094_v31, %v2003_v43  ;;  %v2004_v45 = vsel %vm1878_vm5, %v1730_v33, -inf  ;;  %vm3910_vm5 = vmmov %vm3909_vm4 }
 0x212   : > { %v2118_v48 = vmax.f32 %v2117_v41, %v2004_v45  ;;  %v1460_v49 = vpop.f32.mrb[60].mxu1 }
 0x213   : > { %v1733_v50 = vpop.f32.mrb[60].mxu0  ;;  %v1462_v52 = vpop.f32.mrb[61].mxu1 }
 0x214   : > { %v1734_v51 = vadd.f32 %v1733_v50, %v1460_v49  ;;  %v1735_v54 = vpop.f32.mrb[61].mxu0  ;;  %v1464_v56 = vpop.f32.mrb[62].mxu1 }
 0x215   : > { %v1736_v55 = vadd.f32 %v1735_v54, %v1462_v52  ;;  %v1737_v57 = vpop.f32.mrb[62].mxu0  ;;  %v1466_v61 = vpop.f32.mrb[63].mxu1 }
 0x216   : > { %v2005_v14 = vsel %vm1879_vm6, %v1734_v51, -inf  ;;  %v1738_v58 = vadd.f32 %v1737_v57, %v1464_v56  ;;  %v1739_v63 = vpop.f32.mrb[63].mxu0 }
 0x217   : > { %v2096_v36 = vmax.f32 %v2095_v44, %v2005_v14  ;;  %v2006_v19 = vsel %vm1879_vm6, %v1736_v55, -inf  ;;  %v1740_v1 = vadd.f32 %v1739_v63, %v1466_v61  ;;  %vm3911_vm6 = vcmp.lt.s32.totalorder %v3608_v60, 200 }
 0x218   : > { %v2119_v5 = vmax.f32 %v2118_v48, %v2006_v19  ;;  %v2007_v37 = vsel %vm1880_vm7, %v1738_v58, -inf }
 0x219   : > { %v2097_v6 = vmax.f32 %v2096_v36, %v2007_v37  ;;  %v2008_v38 = vsel %vm1880_vm7, %v1740_v1, -inf  ;;  %vm3912_vm7 = vmmov %vm3911_vm6 }
 0x21a   : > { %v2120_v7 = vmax.f32 %v2119_v5, %v2008_v38  ;;  %v1470_v10 = vpop.f32.mrb[64].mxu1 }
 0x21b   : > { %v1743_v11 = vpop.f32.mrb[64].mxu0  ;;  %v1472_v13 = vpop.f32.mrb[65].mxu1 }
 0x21c   : > { %v1744_v12 = vadd.f32 %v1743_v11, %v1470_v10  ;;  %v1745_v15 = vpop.f32.mrb[65].mxu0  ;;  %v1474_v17 = vpop.f32.mrb[66].mxu1 }
 0x21d   : > { %v1746_v16 = vadd.f32 %v1745_v15, %v1472_v13  ;;  %v1747_v18 = vpop.f32.mrb[66].mxu0  ;;  %v1476_v21 = vpop.f32.mrb[67].mxu1 }
 0x21e   : > { %v2009_v42 = vsel %vm1881_vm8, %v1744_v12, -inf  ;;  %v1748_v20 = vadd.f32 %v1747_v18, %v1474_v17  ;;  %v1749_v22 = vpop.f32.mrb[67].mxu0 }
 0x21f   : > { %v2098_v23 = vmax.f32 %v2097_v6, %v2009_v42  ;;  %v2010_v47 = vsel %vm1881_vm8, %v1746_v16, -inf  ;;  %v1750_v24 = vadd.f32 %v1749_v22, %v1476_v21  ;;  %vm3913_vm8 = vcmp.lt.s32.totalorder %v3615_v2, 200 }
 0x220   : > { %v2121_v53 = vmax.f32 %v2120_v7, %v2010_v47  ;;  %v2011_v25 = vsel %vm1882_vm9, %v1748_v20, -inf }
 0x221   : > { %v2099_v28 = vmax.f32 %v2098_v23, %v2011_v25  ;;  %v2012_v29 = vsel %vm1882_vm9, %v1750_v24, -inf  ;;  %vm3914_vm9 = vmmov %vm3913_vm8 }
 0x222   : > { %v2122_v31 = vmax.f32 %v2121_v53, %v2012_v29  ;;  %v1480_v59 = vpop.f32.mrb[68].mxu1 }
 0x223   : > { %v1753_v33 = vpop.f32.mrb[68].mxu0  ;;  %v1482_v43 = vpop.f32.mrb[69].mxu1 }
 0x224   : > { %v1754_v41 = vadd.f32 %v1753_v33, %v1480_v59  ;;  %v1755_v44 = vpop.f32.mrb[69].mxu0  ;;  %v1484_v48 = vpop.f32.mrb[70].mxu1 }
 0x225   : > { %v1756_v45 = vadd.f32 %v1755_v44, %v1482_v43  ;;  %v1757_v49 = vpop.f32.mrb[70].mxu0  ;;  %v1486_v51 = vpop.f32.mrb[71].mxu1 }
 0x226   : > { %v2013_v4 = vsel %vm1883_vm10, %v1754_v41, -inf  ;;  %v1758_v50 = vadd.f32 %v1757_v49, %v1484_v48  ;;  %v1759_v52 = vpop.f32.mrb[71].mxu0 }
 0x227   : > { %v2100_v54 = vmax.f32 %v2099_v28, %v2013_v4  ;;  %v2014_v9 = vsel %vm1883_vm10, %v1756_v45, -inf  ;;  %v1760_v55 = vadd.f32 %v1759_v52, %v1486_v51  ;;  %vm3915_vm10 = vcmp.lt.s32.totalorder %v3626_v27, 200 }
 0x228   : > { %v2123_v56 = vmax.f32 %v2122_v31, %v2014_v9  ;;  %v2015_v57 = vsel %vm1884_vm11, %v1758_v50, -inf }
 0x229   : > { %v2101_v14 = vmax.f32 %v2100_v54, %v2015_v57  ;;  %v2016_v58 = vsel %vm1884_vm11, %v1760_v55, -inf  ;;  %vm3916_vm11 = vmmov %vm3915_vm10 }
 0x22a   : > { %v2124_v61 = vmax.f32 %v2123_v56, %v2016_v58  ;;  %v1490_v63 = vpop.f32.mrb[72].mxu1 }
 0x22b   : > { %v1763_v36 = vpop.f32.mrb[72].mxu0  ;;  %v1492_v1 = vpop.f32.mrb[73].mxu1 }
 0x22c   : > { %v1764_v19 = vadd.f32 %v1763_v36, %v1490_v63  ;;  %v1765_v5 = vpop.f32.mrb[73].mxu0  ;;  %v1494_v6 = vpop.f32.mrb[74].mxu1 }
 0x22d   : > { %v1766_v37 = vadd.f32 %v1765_v5, %v1492_v1  ;;  %v1767_v38 = vpop.f32.mrb[74].mxu0  ;;  %v1496_v10 = vpop.f32.mrb[75].mxu1 }
 0x22e   : > { %v2017_v30 = vsel %vm1885_vm12, %v1764_v19, -inf  ;;  %v1768_v7 = vadd.f32 %v1767_v38, %v1494_v6  ;;  %v1769_v11 = vpop.f32.mrb[75].mxu0 }
 0x22f   : > { %v2102_v12 = vmax.f32 %v2101_v14, %v2017_v30  ;;  %v2018_v39 = vsel %vm1885_vm12, %v1766_v37, -inf  ;;  %v1770_v13 = vadd.f32 %v1769_v11, %v1496_v10  ;;  %vm3917_vm12 = vcmp.lt.s32.totalorder %v3633_v35, 200 }
 0x230   : > { %v2125_v15 = vmax.f32 %v2124_v61, %v2018_v39  ;;  %v2019_v16 = vsel %vm3905_vm0, %v1768_v7, -inf  ;;  %vm3918_vm0 = vmmov %vm3917_vm12 }
 0x231   : > { %v2103_v17 = vmax.f32 %v2102_v12, %v2019_v16  ;;  %v2020_v18 = vsel %vm3906_vm1, %v1770_v13, -inf  ;;  %vm3919_vm1 = vcmp.lt.s32.totalorder %v3644_v0, 200 }
 0x232   : > { %v2126_v42 = vmax.f32 %v2125_v15, %v2020_v18  ;;  %v1500_v20 = vpop.f32.mrb[76].mxu1 }
 0x233   : > { %v1773_v21 = vpop.f32.mrb[76].mxu0  ;;  %v1502_v23 = vpop.f32.mrb[77].mxu1 }
 0x234   : > { %v1774_v22 = vadd.f32 %v1773_v21, %v1500_v20  ;;  %v1775_v47 = vpop.f32.mrb[77].mxu0  ;;  %v1504_v53 = vpop.f32.mrb[78].mxu1 }
 0x235   : > { %v1776_v24 = vadd.f32 %v1775_v47, %v1502_v23  ;;  %v1777_v25 = vpop.f32.mrb[78].mxu0  ;;  %v1506_v29 = vpop.f32.mrb[79].mxu1 }
 0x236   : > { %v2021_v62 = vsel %vm3907_vm2, %v1774_v22, -inf  ;;  %v1778_v28 = vadd.f32 %v1777_v25, %v1504_v53  ;;  %v1779_v31 = vpop.f32.mrb[79].mxu0  ;;  %vm3920_vm2 = vmmov %vm3919_vm1 }
 0x237   : > { %v2104_v59 = vmax.f32 %v2103_v17, %v2021_v62  ;;  %v2022_v3 = vsel %vm3908_vm3, %v1776_v24, -inf  ;;  %v1780_v33 = vadd.f32 %v1779_v31, %v1506_v29  ;;  %vm2224_vm3 = vcmask (!%p2539_p11), 1047559  }
 0x238   : > { %v2127_v41 = vmax.f32 %v2126_v42, %v2022_v3  ;;  %v2023_v43 = vsel %vm3909_vm4, %v1778_v28, -inf }
 0x239   : > { %v2105_v44 = vmax.f32 %v2104_v59, %v2023_v43  ;;  %v2024_v45 = vsel %vm3910_vm5, %v1780_v33, -inf }
 0x23a   : > { %v2128_v48 = vmax.f32 %v2127_v41, %v2024_v45  ;;  %v1510_v49 = vpop.f32.mrb[80].mxu1 }
 0x23b   : > { %v1783_v4 = vpop.f32.mrb[80].mxu0  ;;  %v1512_v51 = vpop.f32.mrb[81].mxu1 }
 0x23c   : > { %v1784_v50 = vadd.f32 %v1783_v4, %v1510_v49  ;;  %v1785_v52 = vpop.f32.mrb[81].mxu0  ;;  %v1514_v9 = vpop.f32.mrb[82].mxu1 }
 0x23d   : > { %v1786_v54 = vadd.f32 %v1785_v52, %v1512_v51  ;;  %v1787_v55 = vpop.f32.mrb[82].mxu0  ;;  %v1516_v57 = vpop.f32.mrb[83].mxu1 }
 0x23e   : > { %v2025_v26 = vsel %vm3911_vm6, %v1784_v50, -inf  ;;  %v1788_v56 = vadd.f32 %v1787_v55, %v1514_v9  ;;  %v1789_v14 = vpop.f32.mrb[83].mxu0 }
 0x23f   : > { %v2106_v58 = vmax.f32 %v2105_v44, %v2025_v26  ;;  %v2026_v32 = vsel %vm3912_vm7, %v1786_v54, -inf  ;;  %v1790_v61 = vadd.f32 %v1789_v14, %v1516_v57 }
 0x240   : > { %v2129_v63 = vmax.f32 %v2128_v48, %v2026_v32  ;;  %v2027_v36 = vsel %vm3913_vm8, %v1788_v56, -inf }
 0x241   : > { %v2107_v19 = vmax.f32 %v2106_v58, %v2027_v36  ;;  %v2028_v1 = vsel %vm3914_vm9, %v1790_v61, -inf  ;;  %v2043_v36 = vld [vmem:[#allocation2 + $0x10] sm:$0xff] }
 0x242   : > { %v2130_v5 = vmax.f32 %v2129_v63, %v2028_v1  ;;  %v1520_v37 = vpop.f32.mrb[84].mxu1 }
 0x243   : > { %v1793_v6 = vpop.f32.mrb[84].mxu0  ;;  %v1522_v30 = vpop.f32.mrb[85].mxu1 }
 0x244   : > { %v1794_v38 = vadd.f32 %v1793_v6, %v1520_v37  ;;  %v1795_v7 = vpop.f32.mrb[85].mxu0  ;;  %v1524_v11 = vpop.f32.mrb[86].mxu1 }
 0x245   : > { %v1796_v10 = vadd.f32 %v1795_v7, %v1522_v30  ;;  %v1797_v12 = vpop.f32.mrb[86].mxu0  ;;  %v1526_v13 = vpop.f32.mrb[87].mxu1  ;;  %v2150_v30 = vld [vmem:[#allocation2 + $0x8] sm:$0xff] (!%p2539_p11) }
 0x246   : > { %v2029_v60 = vsel %vm3915_vm10, %v1794_v38, -inf  ;;  %v1798_v39 = vadd.f32 %v1797_v12, %v1524_v11  ;;  %v1799_v15 = vpop.f32.mrb[87].mxu0  ;;  %v2153_v11 = vrot.slane (!%p2539_p11), %v2149_v40, 4  ;;  %v2159_v12 = vrot.slane (!%p2539_p11), %v2150_v30, 4 }
 0x247   : > { %v2108_v16 = vmax.f32 %v2107_v19, %v2029_v60  ;;  %v2030_v2 = vsel %vm3916_vm11, %v1796_v10, -inf  ;;  %v1800_v17 = vadd.f32 %v1799_v15, %v1526_v13 }
 0x248   : > { %v2131_v18 = vmax.f32 %v2130_v5, %v2030_v2  ;;  %v2031_v42 = vsel %vm3917_vm12, %v1798_v39, -inf  ;;  %v2044_v5 = vld [vmem:[#allocation2 + $0x18] sm:$0xff]  ;;  %v2154_v13 = vmax.f32 (!%p2539_p11), %v2149_v40, %v2153_v11  ;;  %v2160_v46 = vmax.f32 (!%p2539_p11), %v2150_v30, %v2159_v12 }
 0x249   : > { %v2109_v20 = vmax.f32 %v2108_v16, %v2031_v42  ;;  %v2032_v21 = vsel %vm3918_vm0, %v1800_v17, -inf  ;;  %v2181_v42 = vsub.s32 (!%p2539_p11), 0, %v3460_v34 }
 0x24a   : > { %v2132_v22 = vmax.f32 %v2131_v18, %v2032_v21  ;;  %v1530_v23 = vpop.f32.mrb[88].mxu1  ;;  %v2155_v2 = vrot.slane (!%p2539_p11), %v2154_v13, 2  ;;  %v2161_v17 = vrot.slane (!%p2539_p11), %v2160_v46, 2  ;;  %v2177_v21 = vld [vmem:[%s3852_s2] sm:$0x3] (!%p2539_p11) }
 0x24b   : > { %v1803_v47 = vpop.f32.mrb[88].mxu0  ;;  %v1532_v53 = vpop.f32.mrb[89].mxu1 }
 0x24c   : > { %v1804_v24 = vadd.f32 %v1803_v47, %v1530_v23  ;;  %v1805_v25 = vpop.f32.mrb[89].mxu0  ;;  %v1534_v28 = vpop.f32.mrb[90].mxu1  ;;  %v3167_v23 = vmov (!%p2539_p11), 1983009808  }
 0x24d   : > { %v1806_v62 = vadd.f32 %v1805_v25, %v1532_v53  ;;  %v1807_v29 = vpop.f32.mrb[90].mxu0  ;;  %v1536_v59 = vpop.f32.mrb[91].mxu1  ;;  %v2199_v47 = vunpack.c.l.s4 (!%p2539_p11), %v3167_v23  ;;  %v2162_v53 = vmax.f32 (!%p2539_p11), %v2160_v46, %v2161_v17 }
 0x24e   : > { %v2033_v27 = vsel %vm3919_vm1, %v1804_v24, -inf  ;;  %v1808_v31 = vadd.f32 %v1807_v29, %v1534_v28  ;;  %v1809_v3 = vpop.f32.mrb[91].mxu0  ;;  %v2156_v24 = vmax.f32 (!%p2539_p11), %v2154_v13, %v2155_v2 }
 0x24f   : > { %v2110_v33 = vmax.f32 %v2109_v20, %v2033_v27  ;;  %v2034_v35 = vsel %vm3920_vm2, %v1806_v62, -inf  ;;  %v1810_v41 = vadd.f32 %v1809_v3, %v1536_v59  ;;  %v2163_v29 = vrot.slane (!%p2539_p11), %v2162_v53, 1 }
 0x250   : > { %v2133_v43 = vmax.f32 %v2132_v22, %v2034_v35  ;;  %v2035_v44 = vsel %vm1894_vm13, %v1808_v31, -inf  ;;  %v2185_v22 = vsub.s32 (!%p2539_p11), 1, %v3460_v34  ;;  %v2157_v28 = vrot.slane (!%p2539_p11), %v2156_v24, 1 }
 0x251   : > { %v2111_v45 = vmax.f32 %v2110_v33, %v2035_v44  ;;  %v2036_v48 = vsel %vm1894_vm13, %v1810_v41, -inf  ;;  %v2182_v31 = vrot.slane (!%p2539_p11), %v2177_v21, %v2181_v42  ;;  %v2200_v33 = vunpack.c.0.s8 (!%p2539_p11), %v2199_v47 }
 0x252   : > { %v2134_v49 = vmax.f32 %v2133_v43, %v2036_v48  ;;  %v1540_v4 = vpop.f32.mrb[92].mxu1  ;;  %v2186_v3 = vrot.slane (!%p2539_p11), %v2177_v21, %v2185_v22  ;;  %v2158_v35 = vmax.f32 (!%p2539_p11), %v2156_v24, %v2157_v28  ;;  %v2164_v41 = vmax.f32 (!%p2539_p11), %v2162_v53, %v2163_v29 }
 0x253   : > { %v1813_v50 = vpop.f32.mrb[92].mxu0  ;;  %v1542_v52 = vpop.f32.mrb[93].mxu1  ;;  %vm2218_vm13 = vcmask (!%p2539_p11), 1041409  }
 0x254   : > { %v1814_v51 = vadd.f32 %v1813_v50, %v1540_v4  ;;  %v1815_v54 = vpop.f32.mrb[93].mxu0  ;;  %v1544_v55 = vpop.f32.mrb[94].mxu1  ;;  %v2190_v48 = vadd.f32 (!%p2539_p11), %v2186_v3, %v2164_v41  ;;  %v2203_v50 = vsub.s32 (!%p2539_p11), %v2200_v33, %v3460_v34 }
 0x255   : > { %v1816_v9 = vadd.f32 %v1815_v54, %v1542_v52  ;;  %v1817_v26 = vpop.f32.mrb[94].mxu0  ;;  %v1546_v57 = vpop.f32.mrb[95].mxu1 }
 0x256   : > { %v2037_v0 = vsel %vm1895_vm14, %v1814_v51, -inf  ;;  %v1818_v56 = vadd.f32 %v1817_v26, %v1544_v55  ;;  %v1819_v14 = vpop.f32.mrb[95].mxu0 }
 0x257   : > { %v2112_v58 = vmax.f32 %v2111_v45, %v2037_v0  ;;  %v2038_v8 = vsel %vm1895_vm14, %v1816_v9, -inf  ;;  %v1820_v32 = vadd.f32 %v1819_v14, %v1546_v57  ;;  %v2189_v45 = vadd.f32 (!%p2539_p11), %v2182_v31, %v2158_v35 }
 0x258   : > { %v2135_v61 = vmax.f32 %v2134_v49, %v2038_v8  ;;  %v2039_v63 = vsel %vm1896_vm15, %v1818_v56, -inf  ;;  %2148 = sbr.rel (%p2539_p11) target bundleno = 639 (0x27f), region = 48  ;;  %vm2220_vm14 = vcmask (!%p2539_p11), 1043459  }
 0x259   : > { %v2113_v19 = vmax.f32 %v2112_v58, %v2039_v63  ;;  %v2040_v1 = vsel %vm1896_vm15, %v1820_v32, -inf  ;;  %v2197_v51 = vcombine.low (!%p2539_p11), %v2189_v45, %v2190_v48  ;;  %vm2222_vm15 = vcmask (!%p2539_p11), 1045509  }
 0x25a   : > { %v2136_v37 = vmax.f32 %v2135_v61, %v2040_v1 }
 0x25b   : > { %v2139_v6 = vmax.f32 %v2043_v36, %v2113_v19  ;;  %v2204_v54 = vrot.slane (!%p2539_p11), %v2197_v51, %v2203_v50 }
 0x25c   : > { %v2140_v38 = vmax.f32 %v2044_v5, %v2136_v37 }
 0x25d   : > { %2143 = vst [vmem:[#allocation2 + $0x10] sm:$0xff] %v2139_v6 }
 0x25e   : > { %2144 = vst [vmem:[#allocation2 + $0x18] sm:$0xff] %v2140_v38 }
 0x264   : > { %v2151_v7 = vld [vmem:[#allocation2 + $0x10] sm:$0xff] }
 0x265   : > { %v2152_v10 = vld [vmem:[#allocation2 + $0x18] sm:$0xff]  ;;  %v2165_v60 = vrot.slane %v2151_v7, 4 }
 0x266   : > { %v2171_v39 = vrot.slane %v2152_v10, 4 }
 0x267   : > { %v2166_v15 = vmax.f32 %v2151_v7, %v2165_v60 }
 0x268   : > { %v2172_v16 = vmax.f32 %v2152_v10, %v2171_v39 }
 0x269   : > { %v2167_v18 = vrot.slane %v2166_v15, 2 }
 0x26a   : > { %v2173_v20 = vrot.slane %v2172_v16, 2 }
 0x26b   : > { %v2168_v25 = vmax.f32 %v2166_v15, %v2167_v18 }
 0x26c   : > { %v2174_v62 = vmax.f32 %v2172_v16, %v2173_v20 }
 0x26d   : > { %v2169_v27 = vrot.slane %v2168_v25, 1 }
 0x26e   : > { %v2175_v59 = vrot.slane %v2174_v62, 1 }
 0x26f   : > { %v2170_v43 = vmax.f32 %v2168_v25, %v2169_v27 }
 0x270   : > { %v2176_v44 = vmax.f32 %v2174_v62, %v2175_v59 }
 0x271   : > { %v2191_v49 = vadd.f32 %v2182_v31, %v2170_v43 }
 0x272   : > { %v2192_v4 = vadd.f32 %v2186_v3, %v2176_v44 }
 0x274   : > { %v2205_v52 = vcombine.low %v2191_v49, %v2192_v4 }
 0x276   : > { %v2212_v9 = vrot.slane %v2205_v52, %v2203_v50 }
 0x278   : > { %v2217_v55 = vrot.slane %v2212_v9, 7 }
 0x27a   : > { %v2219_v26 = vsel %vm2218_vm13, %v2217_v55, %v2204_v54 }
 0x27b   : > { %v2221_v0 = vsel %vm2220_vm14, %v2217_v55, %v2219_v26 }
 0x27c   : > { %v2223_v56 = vsel %vm2222_vm15, %v2217_v55, %v2221_v0 }
 0x27d   : > { %v2225_v57 = vsel %vm2224_vm3, %v2217_v55, %v2223_v56 }
 0x27e   : > { %2227 = vst [vmem:[%s289_s11] sm:$0xf] %v2225_v57 }
 0x27f PF: > { %s3921_s15 = sld [smem:[#allocation21_spill]]  ;;  %s2546_s27 = sshll.u32 %s3144_s19, 6 }
 0x280   : > { %s3922_s10 = sld [smem:[#allocation26_spill]]  ;;  %s2245_s4 = sshll.u32 %s289_s11, 4  ;;  %s2246_s4 = int_to_ptr.vmem [resolvable:$true] %s2245_s4 }
 0x281   : > { %s2229_s28 = scalar_lea.sflag [#allocation5], %s287_s1  ;;  %s3030_s25 = scalar_lea.vmem %s2246_s4, 64 }
 0x282   : > { %p3031_p0 = scmp.ne.s32.totalorder %s2246_s4, %s3030_s25  ;;  %s3168_s6 = smov [#allocation8]  }
 0x283   : > { %s3034_s24 = sshll.u32 %s3168_s6, 4  ;;  %s3035_s24 = int_to_ptr.vmem [resolvable:$false] %s3034_s24 }
 0x284   : > { %s3036_s26 = scalar_lea.vmem %s3035_s24, 128  ;;  %p3037_p10 = scmp.lt.s32.totalorder %s2246_s4, %s3035_s24 }
 0x285   : > { %p3923_p1 = scmp.ne.s32.totalorder %s3921_s15, 0  ;;  %p3038_p13 = scmp.lt.s32.totalorder %s3036_s26, %s3030_s25 }
 0x286   : > { %s3790_s23 = scalar_lea.hbm %s3922_s10, %s2546_s27 }
 0x287   : > { %p3032_p2 = pnand %p3031_p0, %p3923_p1  ;;  %p3039_p3 = por %p3038_p13, %p3037_p10 }
 0x289   : > { %p3033_p8 = pneg %p3032_p2 }
 0x28b   : > { %p3040_p6 = pnand %p3039_p3, %p3033_p8 }
 0x28d   : > { %3043 = shalt.err (!%p3040_p6)
}
 0x28e   : > { %s3044_s19 = scalar_lea.hbm %s3790_s23, 64  ;;  %s3048_s12 = scalar_lea.hbm %s3922_s10, 128 }
 0x28f   : > { %p3045_p7 = scmp.ne.s32.totalorder %s3790_s23, %s3044_s19  ;;  %p3049_p5 = scmp.lt.u32.totalorder %s3790_s23, %s3922_s10 }
 0x290   : > { %p3050_p9 = scmp.lt.u32.totalorder %s3048_s12, %s3044_s19  ;;  %p3052_p0 = scmp.lt.u32.totalorder %s3044_s19, %s3790_s23 }
 0x291   : > { %p3046_p12 = pnand %p3045_p7, %p3923_p1 }
 0x292   : > { %p3051_p11 = por %p3050_p9, %p3049_p5 }
 0x293   : > { %p3047_p4 = pneg %p3046_p12 }
 0x294   : > { %p3053_p2 = por %p3052_p0, %p3051_p11 }
 0x296   : > { %p3054_p8 = pnand %p3053_p2, %p3047_p4 }
 0x298   : > { %3057 = shalt.err (!%p3054_p8)
}
 0x299   : > { %2651 = dma.vmem_to_hbm [thread:$0]  (%p3923_p1), %s2246_s4, 64, %s3790_s23, %s2229_s28  }
 0x29a PF: > { %s3924_s8 = sld [smem:[#allocation18_spill]]  ;;  %s3925_s3 = sld [smem:[#allocation14_spill]] }
 0x29b   : > { %s3926_s1 = sld [smem:[#allocation24_spill]] }
 0x2a0   : > { %p2663_p10 = scmp.ge.s32.totalorder %s3924_s8, 2  ;;  %s2257_s21 = sand.u32 1, %s3925_s3  }
 0x2a1   : > { %p3927_p13 = scmp.ne.s32.totalorder %s3926_s1, 0  ;;  %s2258_s11 = scalar_lea.sflag [#allocation5], %s2257_s21 }
 0x2a3   : > { %p2658_p3 = pnand %p2663_p10, %p3927_p13 }
 0x2a5   : > { %3111 = dma.done.wait (!%p2658_p3), %s2258_s11, 64  }
 0x2a6   : > { %3113 = vsyncadd (!%p2658_p3), %s2258_s11, 4294967232  ;;  %s20_s22 = sadd.s32 1, %s3924_s8   ;;  %s3928_s30 = sld [smem:[#allocation15_spill]] }
 0x2a7   : > { %p17_p6 = scmp.ge.s32.totalorder %s20_s22, 6   ;;  %s3929_s14 = sld [smem:[#allocation22_spill]] }
 0x2a8   : > { %s3930_s18 = sld [smem:[#allocation16_spill]]  ;;  %s3931_s17 = sld [smem:[#allocation23_spill]] }
 0x2a9   : > { %s3932_s19 = sld [smem:[#allocation17_spill]]  ;;  %s3933_s5 = sld [smem:[#allocation19_spill]] }
 0x2aa   : > { %s3934_s21 = sld [smem:[#allocation20_spill]]  ;;  %s3935_s12 = smov %s3120_s13 }
 0x2ab   : > { %s3937_s15 = smov %s3132_s16  ;;  %19 = sbr.rel (!%p17_p6) target bundleno = 13 (0xd), region = 98 }
 0x2ac   : > { %s3936_s13 = smov %s3928_s30 }
 0x2ae   : > { %s3938_s16 = smov %s3930_s18  ;;  %s3939_s18 = smov %s3148_s20 }
 0x2af   : > { %s3940_s20 = smov %s3933_s5 }
 0x2b2   :  { %2263 = vsyncpa [#allocation4], 1 }
 0x2b3   :  { %2265 = vsyncpa [#allocation4 + $0x1], 1 }
 0x2b4   :  { %2266 = vsyncpa [#allocation7], 1 }
 0x2b5   :  { %2267 = vsyncpa [#allocation5], 1 }
 0x2b6   :  { %2269 = vsyncpa [#allocation5 + $0x1], 1 }

</bundles_post_ra>
